<compile_context>
chip_gen: v6e
topology: v6e:2x2x1
jax: 0.10.0
libtpu: 0.0.40
codegen_flags: <defaults>
</compile_context>

<pallas_src>
import functools

import jax
import jax.numpy as jnp
from jax import lax
from jax.experimental import pallas as pl
from jax.experimental.pallas import tpu as pltpu


_VMEM_LIMIT = 48 * 1024 * 1024   # below v7x's 64 MiB physical, above the
                                 # 16/32 MiB default scoped limits of v5e/v6e.


def _pick_tile(n, target, gran=8):
    """Largest divisor of n that is <= target and a multiple of `gran`.

    Falls back to the full dimension when no such divisor exists (correct,
    may use more VMEM).  TODO(synk): pad N / masked tails for awkward N.
    """
    if n <= target:
        return n
    t = (target // gran) * gran
    while t >= gran:
        if n % t == 0:
            return t
        t -= gran
    return n


# ---------------------------------------------------------------------------
# Kernel 1: fused pairwise distance + k-nearest-neighbor selection.
#   For each row tile: s[i, j] = -(|x_i - x_j|^2)  (self masked out), then k
#   iterative (max, arg-max, knock-out) sweeps over the lane axis emit the
#   k nearest non-self neighbor indices directly — no N x N HBM round trip.
# ---------------------------------------------------------------------------
def _knn_kernel(xr_ref, xct_ref, sqc_ref, o_ref, *, k):
    # xr:  (1, TR, C) f32 row tile
    # xct: (C, N)     f32 all points, pre-transposed (batch dim squeezed)
    # sqc: (1, 1, N)  f32 per-point squared norms (precomputed per batch)
    # o:   (1, TR, k) int32 neighbor indices
    tr = xr_ref.shape[1]
    n = xct_ref.shape[1]

    xr = xr_ref[0]                                                     # (TR, C)
    g = jnp.dot(xr, xct_ref[...], preferred_element_type=jnp.float32)  # (TR, N)
    sq_r = jnp.sum(xr * xr, axis=1, keepdims=True)                     # (TR, 1)
    sq_c = sqc_ref[0]                                                  # (1, N)

    # negated squared distance ("similarity"): larger == closer
    s = 2.0 * g - sq_r - sq_c                                          # (TR, N)

    row0 = pl.program_id(1) * tr
    ri = row0 + lax.broadcasted_iota(jnp.int32, (tr, n), 0)
    ci = lax.broadcasted_iota(jnp.int32, (tr, n), 1)
    cif = ci.astype(jnp.float32)                      # exact for n < 2**24
    neg = jnp.float32(-3.0e38)
    s = jnp.where(ri == ci, neg, s)                   # exclude self

    out = jnp.zeros((tr, k), jnp.int32)
    lane = lax.broadcasted_iota(jnp.int32, (tr, k), 1)
    for j in range(k):                                # k static, small
        m = jnp.max(s, axis=-1, keepdims=True)                          # (TR, 1)
        amf = jnp.min(jnp.where(s == m, cif, jnp.float32(n)),
                      axis=-1, keepdims=True)                           # (TR, 1)
        out = jnp.where(lane == j, amf.astype(jnp.int32), out)
        s = jnp.where(cif == amf, neg, s)             # knock out the winner
    o_ref[0] = out


def _knn_row_tile(n):
    # keep each (TR, n) f32 slab around <= 4 MiB so the handful of live
    # temporaries stays inside scoped VMEM even on v5e / v7x.
    cap = max(8, (4 * 1024 * 1024) // max(4 * n, 1))
    return _pick_tile(n, min(512, cap), gran=8)


def get_knn_idx(x, k):
    """k nearest non-self neighbors (B, N, k).

    Matches pytorch3d.ops.knn_points(x, x, K=k+1) followed by
    remove_self_loops for point clouds without duplicate points.
    """
    B, N, C = x.shape
    assert k + 1 <= N
    xf = x.astype(jnp.float32)
    xt = jnp.swapaxes(xf, 1, 2)                                         # (B, C, N)
    sqc = jnp.swapaxes(jnp.sum(xf * xf, axis=-1, keepdims=True), 1, 2)  # (B, 1, N)
    TR = _knn_row_tile(N)

    return pl.pallas_call(
        functools.partial(_knn_kernel, k=k),
        out_shape=jax.ShapeDtypeStruct((B, N, k), jnp.int32),
        grid_spec=pltpu.PrefetchScalarGridSpec(
            num_scalar_prefetch=0,
            grid=(B, N // TR),
            in_specs=[
                pl.BlockSpec((1, TR, C), lambda b, t: (b, t, 0)),
                pl.BlockSpec((None, C, N), lambda b, t: (b, 0, 0)),
                pl.BlockSpec((1, 1, N), lambda b, t: (b, 0, 0)),
            ],
            out_specs=pl.BlockSpec((1, TR, k), lambda b, t: (b, t, 0)),
        ),
        compiler_params=pltpu.CompilerParams(
            dimension_semantics=("parallel", "parallel"),
            vmem_limit_bytes=_VMEM_LIMIT),
    )(xf, xt, sqc)


# ---------------------------------------------------------------------------
# Kernel 2: EdgeConv with in-kernel neighbor gather.
#   out_i = max_{j in knn(i)} ReLU(W [x_i, x_j - x_i] + b)
#         = ReLU(x_i (w1 - w2) + b + max_j (x_j w2))
# idx lives in SMEM (scalar prefetch), the whole per-batch x is resident in
# VMEM; neighbor rows are gathered into a VMEM scratch and fed to ONE MXU
# matmul — no (B, K, N, Cin) HBM materialization.
# ---------------------------------------------------------------------------
def _edgeconv_kernel(idx_ref, x_ref, wd_ref, w2_ref, b_ref, o_ref, xg_ref,
                     *, K, TN):
    # idx: SMEM (B, N*K) int32      x: VMEM (N, Cin) f32 (whole batch resident)
    # wd = w1 - w2, w2: (Cin, F) bf16      b: (1, F) f32
    # o:  (1, TN, F) f32 output tile       xg: VMEM scratch (K*TN, Cin) f32
    b = pl.program_id(0)
    t = pl.program_id(1)
    row0 = pl.multiple_of(t * TN, 8)

    # ---- in-kernel gather: xg[kk*TN + i] = x[idx[row0 + i, kk]] ----
    def gather_point(i, carry):
        src = (row0 + i) * K
        for kk in range(K):                           # K static, small
            j = idx_ref[b, src + kk]
            xg_ref[pl.ds(kk * TN + i, 1), :] = x_ref[pl.ds(j, 1), :]
        return carry

    lax.fori_loop(0, TN, gather_point, 0)

    # ---- fused EdgeConv epilogue ----
    xi = x_ref[pl.ds(row0, TN), :].astype(jnp.bfloat16)                  # (TN, Cin)
    ci = jnp.dot(xi, wd_ref[...], preferred_element_type=jnp.float32) + b_ref[...]

    xg = xg_ref[...].astype(jnp.bfloat16)                                # (K*TN, Cin)
    yj = jnp.dot(xg, w2_ref[...], preferred_element_type=jnp.float32)    # (K*TN, F)

    mj = yj[0:TN]
    for kk in range(1, K):                   # max over neighbors (ReLU monotone)
        mj = jnp.maximum(mj, yj[kk * TN:(kk + 1) * TN])

    o_ref[0] = jnp.maximum(ci + mj, 0.0).astype(o_ref.dtype)


def edge_conv(x, idx, w, b, *, tile_n=512):
    # TODO(synk): DynamicEdgeConv's internal MLP is not given in the reference
    # code; a single Linear(2*Cin, F) + ReLU with 'max' aggregation
    # (torch_geometric EdgeConv default) is assumed here.
    B, N, Cin = x.shape
    K = idx.shape[-1]
    F_out = w.shape[1]

    x_f = x.astype(jnp.float32)
    # Flattened to (B, N*K) so SMEM does not pad the k axis out to 128 lanes.
    # TODO(synk): for very large B*N*K move idx to per-tile VMEM blocks instead.
    idx_flat = idx.reshape(B, N * K).astype(jnp.int32)

    w1 = w[:Cin].astype(jnp.float32)
    w2 = w[Cin:].astype(jnp.float32)
    wd = (w1 - w2).astype(jnp.bfloat16)            # folds the "- x_i w2" term
    w2b = w2.astype(jnp.bfloat16)
    b2d = b.reshape(1, F_out).astype(jnp.float32)

    TN = _pick_tile(N, tile_n, gran=8)
    kernel = functools.partial(_edgeconv_kernel, K=K, TN=TN)

    return pl.pallas_call(
        kernel,
        out_shape=jax.ShapeDtypeStruct((B, N, F_out), jnp.float32),
        grid_spec=pltpu.PrefetchScalarGridSpec(
            num_scalar_prefetch=1,
            grid=(B, N // TN),
            in_specs=[
                pl.BlockSpec((None, N, Cin), lambda bb, t, idx_r: (bb, 0, 0)),
                pl.BlockSpec((Cin, F_out), lambda bb, t, idx_r: (0, 0)),
                pl.BlockSpec((Cin, F_out), lambda bb, t, idx_r: (0, 0)),
                pl.BlockSpec((1, F_out), lambda bb, t, idx_r: (0, 0)),
            ],
            out_specs=pl.BlockSpec((1, TN, F_out), lambda bb, t, idx_r: (bb, t, 0)),
            scratch_shapes=[pltpu.VMEM((K * TN, Cin), jnp.float32)],
        ),
        compiler_params=pltpu.CompilerParams(
            dimension_semantics=("parallel", "parallel"),
            vmem_limit_bytes=_VMEM_LIMIT),
    )(idx_flat, x_f, wd, w2b, b2d)


# ---------------------------------------------------------------------------
# Kernel 3: head  relu(L1) -> relu(L2) -> mean over points -> tanh(L3)
# N-tiled with an f32 VMEM accumulator for the point-mean.
# ---------------------------------------------------------------------------
def _head_kernel(x_ref, w1_ref, w2_ref, b2_ref, w3_ref, b3_ref, o_ref, acc_ref,
                 *, inv_n):
    t = pl.program_id(1)

    @pl.when(t == 0)
    def _():
        acc_ref[...] = jnp.zeros_like(acc_ref)

    xb = x_ref[0]                                                        # (TN, E) bf16
    h1 = jnp.maximum(
        jnp.dot(xb, w1_ref[...], preferred_element_type=jnp.float32), 0.0)
    h2 = jnp.maximum(
        jnp.dot(h1.astype(w2_ref.dtype), w2_ref[...],
                preferred_element_type=jnp.float32) + b2_ref[...], 0.0)  # (TN, H2)
    acc_ref[...] += jnp.sum(h2, axis=0, keepdims=True)                   # (1, H2)

    @pl.when(t == pl.num_programs(1) - 1)
    def _():
        m = acc_ref[...] * inv_n                                         # (1, H2)
        o_ref[0] = jnp.tanh(
            jnp.dot(m.astype(w3_ref.dtype), w3_ref[...],
                    preferred_element_type=jnp.float32) + b3_ref[...])


def head(x, w1, w2, b2, w3, b3, *, tile_n=1024):
    B, N, E = x.shape
    H1 = w1.shape[1]
    H2 = w2.shape[1]
    out_dim = w3.shape[1]
    TN = _pick_tile(N, tile_n, gran=8)

    kernel = functools.partial(_head_kernel, inv_n=1.0 / float(N))
    out = pl.pallas_call(
        kernel,
        out_shape=jax.ShapeDtypeStruct((B, 1, out_dim), jnp.float32),
        grid_spec=pltpu.PrefetchScalarGridSpec(
            num_scalar_prefetch=0,
            grid=(B, N // TN),
            in_specs=[
                pl.BlockSpec((1, TN, E), lambda b, t: (b, t, 0)),
                pl.BlockSpec((E, H1), lambda b, t: (0, 0)),
                pl.BlockSpec((H1, H2), lambda b, t: (0, 0)),
                pl.BlockSpec((1, H2), lambda b, t: (0, 0)),
                pl.BlockSpec((H2, out_dim), lambda b, t: (0, 0)),
                pl.BlockSpec((1, out_dim), lambda b, t: (0, 0)),
            ],
            out_specs=pl.BlockSpec((1, 1, out_dim), lambda b, t: (b, 0, 0)),
            scratch_shapes=[pltpu.VMEM((1, H2), jnp.float32)],
        ),
        compiler_params=pltpu.CompilerParams(
            dimension_semantics=("parallel", "arbitrary")),
    )(x.astype(jnp.bfloat16),
      w1.astype(jnp.bfloat16), w2.astype(jnp.bfloat16),
      b2.reshape(1, H2).astype(jnp.float32),
      w3.astype(jnp.bfloat16), b3.reshape(1, out_dim).astype(jnp.float32))
    return out.reshape(B, out_dim)


# ---------------------------------------------------------------------------
# Parameter init (deterministic, torch.nn.Linear default: U(-1/sqrt(fan_in), ..))
# ---------------------------------------------------------------------------
def _linear_init(key, fan_in, fan_out, bias=True):
    kw, kb = jax.random.split(key)
    bound = 1.0 / (fan_in ** 0.5)
    w = jax.random.uniform(kw, (fan_in, fan_out), jnp.float32, -bound, bound)
    b = (jax.random.uniform(kb, (fan_out,), jnp.float32, -bound, bound)
         if bias else None)
    return w, b


def init_scalenet_params(key, embedding_dim=512, output_dim=1):
    keys = jax.random.split(key, 7)
    p = {}
    p["conv1"] = _linear_init(keys[0], 2 * 3, 16)
    p["conv2"] = _linear_init(keys[1], 2 * 16, 24)
    p["conv3"] = _linear_init(keys[2], 2 * 24, 72)
    p["conv4"] = _linear_init(keys[3], 2 * (16 + 24 + 72), embedding_dim)
    p["linear1_w"], _ = _linear_init(keys[4], embedding_dim, 128, bias=False)
    p["linear2_w"], p["linear2_b"] = _linear_init(keys[5], 128, 64)
    p["linear3_w"], p["linear3_b"] = _linear_init(keys[6], 64, output_dim)
    return p


# ---------------------------------------------------------------------------
# Full forward pass (z_dim = 0 configuration -> returns (x, None))
# ---------------------------------------------------------------------------
def scalenet_forward(params, x, disp_feat=None, k=8):
    # TODO(synk): z_dim>0 branch (linear_proj + Dropout on disp_feat) not exercised.
    assert disp_feat is None
    x = x.astype(jnp.float32)
    idx = get_knn_idx(x, k)
    x1 = edge_conv(x, idx, *params["conv1"])                  # (B, N, 16)  f32
    idx = get_knn_idx(x1, k)
    x2 = edge_conv(x1, idx, *params["conv2"])                 # (B, N, 24)
    idx = get_knn_idx(x2, k)
    x3 = edge_conv(x2, idx, *params["conv3"])                 # (B, N, 72)
    idx = get_knn_idx(x3, k)
    x_combined = jnp.concatenate([x1, x2, x3], axis=-1)       # (B, N, 112)
    x4 = edge_conv(x_combined, idx, *params["conv4"])         # (B, N, emb)
    out = head(x4, params["linear1_w"], params["linear2_w"], params["linear2_b"],
               params["linear3_w"], params["linear3_b"])      # (B, output_dim)
    return out, None


if __name__ == "__main__":
    B, N, K = 2, 64, 8                 # small shapes: 2 clouds of 64 points, k=8 neighbors
    EMB, OUT = 128, 1                  # small embedding_dim for the test

    key = jax.random.PRNGKey(0)
    k_param, k_data = jax.random.split(key)
    params = init_scalenet_params(k_param, embedding_dim=EMB, output_dim=OUT)
    x = jax.random.normal(k_data, (B, N, 3), dtype=jnp.float32)

    out, aux = scalenet_forward(params, x, disp_feat=None, k=K)
    out = jax.block_until_ready(out)
    assert out.shape == (B, OUT) and aux is None
    assert bool(jnp.all(jnp.isfinite(out)))
    print("KERNEL_OK")
</pallas_src>

<mosaic_0001>
module attributes {stable_mosaic.version = 11 : i64} {
  func.func @_knn_kernel(%arg0: i32, %arg1: i32, %arg2: memref<1x64x3xf32, #tpu.memory_space<vmem>>, %arg3: memref<1x3x64xf32, #tpu.memory_space<vmem>>, %arg4: memref<1x1x64xf32, #tpu.memory_space<vmem>>, %arg5: memref<1x64x8xi32, #tpu.memory_space<vmem>>) attributes {dimension_semantics = [#tpu.dimension_semantics<parallel>, #tpu.dimension_semantics<parallel>], iteration_bounds = array<i64: 2, 1>, scalar_prefetch = 0 : i64, scratch_operands = 0 : i64, tpu.core_type = #tpu.core_type<tc>, window_params = [{transform_indices = @transform_0, window_bounds = array<i64: 1, 64, 3>}, {transform_indices = @transform_1, window_bounds = array<i64: 1, 3, 64>}, {transform_indices = @transform_2, window_bounds = array<i64: 1, 1, 64>}, {transform_indices = @transform_3, window_bounds = array<i64: 1, 64, 8>}]} {
    %c0 = arith.constant 0 : index
    %c0_0 = arith.constant 0 : index
    %c0_1 = arith.constant 0 : index
    %0 = vector.load %arg2[%c0, %c0_0, %c0_1] : memref<1x64x3xf32, #tpu.memory_space<vmem>>, vector<1x64x3xf32>
    %1 = vector.shape_cast %0 : vector<1x64x3xf32> to vector<64x3xf32>
    %c0_2 = arith.constant 0 : index
    %c0_3 = arith.constant 0 : index
    %c0_4 = arith.constant 0 : index
    %2 = vector.load %arg3[%c0_2, %c0_3, %c0_4] : memref<1x3x64xf32, #tpu.memory_space<vmem>>, vector<1x3x64xf32>
    %3 = vector.shape_cast %2 : vector<1x3x64xf32> to vector<3x64xf32>
    %cst = arith.constant dense<0.000000e+00> : vector<64x64xf32>
    %4 = tpu.matmul %1, %3, %cst {dimension_numbers = #tpu.dot_dimension_numbers<[1], [0], [0], [1], [0, 0, 1, 1], [], []>} : vector<64x3xf32>, vector<3x64xf32>, vector<64x64xf32> -> vector<64x64xf32>
    %5 = arith.mulf %1, %1 : vector<64x3xf32>
    %cst_5 = arith.constant dense<0.000000e+00> : vector<64xf32>
    %6 = vector.multi_reduction <add>, %5, %cst_5 [1] : vector<64x3xf32> to vector<64xf32>
    %7 = vector.shape_cast %6 : vector<64xf32> to vector<64x1xf32>
    %c0_6 = arith.constant 0 : index
    %c0_7 = arith.constant 0 : index
    %c0_8 = arith.constant 0 : index
    %8 = vector.load %arg4[%c0_6, %c0_7, %c0_8] : memref<1x1x64xf32, #tpu.memory_space<vmem>>, vector<1x1x64xf32>
    %9 = vector.shape_cast %8 : vector<1x1x64xf32> to vector<1x64xf32>
    %cst_9 = arith.constant 2.000000e+00 : f32
    %10 = vector.broadcast %cst_9 : f32 to vector<64x64xf32>
    %11 = arith.mulf %10, %4 : vector<64x64xf32>
    %12 = vector.broadcast %7 : vector<64x1xf32> to vector<64x64xf32>
    %13 = arith.subf %11, %12 : vector<64x64xf32>
    %14 = vector.broadcast %9 : vector<1x64xf32> to vector<64x64xf32>
    %15 = arith.subf %13, %14 : vector<64x64xf32>
    %c64_i32 = arith.constant 64 : i32
    %16 = arith.muli %arg1, %c64_i32 : i32
    %17 = tpu.iota {dimensions = array<i32: 0>} : vector<64x64xi32>
    %18 = vector.broadcast %16 : i32 to vector<64x64xi32>
    %19 = arith.addi %18, %17 : vector<64x64xi32>
    %20 = tpu.iota {dimensions = array<i32: 1>} : vector<64x64xi32>
    %21 = arith.sitofp %20 : vector<64x64xi32> to vector<64x64xf32>
    %22 = arith.cmpi eq, %19, %20 : vector<64x64xi32>
    %cst_10 = arith.constant -3.000000e+38 : f32
    %23 = vector.broadcast %cst_10 : f32 to vector<64x64xf32>
    %24 = arith.select %22, %23, %15 : vector<64x64xi1>, vector<64x64xf32>
    %c0_i32 = arith.constant 0 : i32
    %25 = vector.broadcast %c0_i32 : i32 to vector<64x8xi32>
    %26 = tpu.iota {dimensions = array<i32: 1>} : vector<64x8xi32>
    %cst_11 = arith.constant dense<0xFF800000> : vector<64xf32>
    %27 = vector.multi_reduction <maximumf>, %24, %cst_11 [1] : vector<64x64xf32> to vector<64xf32>
    %28 = vector.shape_cast %27 : vector<64xf32> to vector<64x1xf32>
    %29 = vector.broadcast %28 : vector<64x1xf32> to vector<64x64xf32>
    %30 = arith.cmpf oeq, %24, %29 : vector<64x64xf32>
    %cst_12 = arith.constant 6.400000e+01 : f32
    %31 = vector.broadcast %cst_12 : f32 to vector<64x64xf32>
    %32 = arith.select %30, %21, %31 : vector<64x64xi1>, vector<64x64xf32>
    %cst_13 = arith.constant dense<0x7F800000> : vector<64xf32>
    %33 = vector.multi_reduction <minimumf>, %32, %cst_13 [1] : vector<64x64xf32> to vector<64xf32>
    %34 = vector.shape_cast %33 : vector<64xf32> to vector<64x1xf32>
    %c0_i32_14 = arith.constant 0 : i32
    %35 = vector.broadcast %c0_i32_14 : i32 to vector<64x8xi32>
    %36 = arith.cmpi eq, %26, %35 : vector<64x8xi32>
    %37 = arith.fptosi %34 : vector<64x1xf32> to vector<64x1xi32>
    %38 = vector.shape_cast %37 : vector<64x1xi32> to vector<64x1xi32>
    %39 = vector.broadcast %38 : vector<64x1xi32> to vector<64x8xi32>
    %40 = arith.select %36, %39, %25 : vector<64x8xi1>, vector<64x8xi32>
    %41 = vector.broadcast %34 : vector<64x1xf32> to vector<64x64xf32>
    %42 = arith.cmpf oeq, %21, %41 : vector<64x64xf32>
    %cst_15 = arith.constant -3.000000e+38 : f32
    %43 = vector.broadcast %cst_15 : f32 to vector<64x64xf32>
    %44 = arith.select %42, %43, %24 : vector<64x64xi1>, vector<64x64xf32>
    %cst_16 = arith.constant dense<0xFF800000> : vector<64xf32>
    %45 = vector.multi_reduction <maximumf>, %44, %cst_16 [1] : vector<64x64xf32> to vector<64xf32>
    %46 = vector.shape_cast %45 : vector<64xf32> to vector<64x1xf32>
    %47 = vector.broadcast %46 : vector<64x1xf32> to vector<64x64xf32>
    %48 = arith.cmpf oeq, %44, %47 : vector<64x64xf32>
    %cst_17 = arith.constant 6.400000e+01 : f32
    %49 = vector.broadcast %cst_17 : f32 to vector<64x64xf32>
    %50 = arith.select %48, %21, %49 : vector<64x64xi1>, vector<64x64xf32>
    %cst_18 = arith.constant dense<0x7F800000> : vector<64xf32>
    %51 = vector.multi_reduction <minimumf>, %50, %cst_18 [1] : vector<64x64xf32> to vector<64xf32>
    %52 = vector.shape_cast %51 : vector<64xf32> to vector<64x1xf32>
    %c1_i32 = arith.constant 1 : i32
    %53 = vector.broadcast %c1_i32 : i32 to vector<64x8xi32>
    %54 = arith.cmpi eq, %26, %53 : vector<64x8xi32>
    %55 = arith.fptosi %52 : vector<64x1xf32> to vector<64x1xi32>
    %56 = vector.shape_cast %55 : vector<64x1xi32> to vector<64x1xi32>
    %57 = vector.broadcast %56 : vector<64x1xi32> to vector<64x8xi32>
    %58 = arith.select %54, %57, %40 : vector<64x8xi1>, vector<64x8xi32>
    %59 = vector.broadcast %52 : vector<64x1xf32> to vector<64x64xf32>
    %60 = arith.cmpf oeq, %21, %59 : vector<64x64xf32>
    %cst_19 = arith.constant -3.000000e+38 : f32
    %61 = vector.broadcast %cst_19 : f32 to vector<64x64xf32>
    %62 = arith.select %60, %61, %44 : vector<64x64xi1>, vector<64x64xf32>
    %cst_20 = arith.constant dense<0xFF800000> : vector<64xf32>
    %63 = vector.multi_reduction <maximumf>, %62, %cst_20 [1] : vector<64x64xf32> to vector<64xf32>
    %64 = vector.shape_cast %63 : vector<64xf32> to vector<64x1xf32>
    %65 = vector.broadcast %64 : vector<64x1xf32> to vector<64x64xf32>
    %66 = arith.cmpf oeq, %62, %65 : vector<64x64xf32>
    %cst_21 = arith.constant 6.400000e+01 : f32
    %67 = vector.broadcast %cst_21 : f32 to vector<64x64xf32>
    %68 = arith.select %66, %21, %67 : vector<64x64xi1>, vector<64x64xf32>
    %cst_22 = arith.constant dense<0x7F800000> : vector<64xf32>
    %69 = vector.multi_reduction <minimumf>, %68, %cst_22 [1] : vector<64x64xf32> to vector<64xf32>
    %70 = vector.shape_cast %69 : vector<64xf32> to vector<64x1xf32>
    %c2_i32 = arith.constant 2 : i32
    %71 = vector.broadcast %c2_i32 : i32 to vector<64x8xi32>
    %72 = arith.cmpi eq, %26, %71 : vector<64x8xi32>
    %73 = arith.fptosi %70 : vector<64x1xf32> to vector<64x1xi32>
    %74 = vector.shape_cast %73 : vector<64x1xi32> to vector<64x1xi32>
    %75 = vector.broadcast %74 : vector<64x1xi32> to vector<64x8xi32>
    %76 = arith.select %72, %75, %58 : vector<64x8xi1>, vector<64x8xi32>
    %77 = vector.broadcast %70 : vector<64x1xf32> to vector<64x64xf32>
    %78 = arith.cmpf oeq, %21, %77 : vector<64x64xf32>
    %cst_23 = arith.constant -3.000000e+38 : f32
    %79 = vector.broadcast %cst_23 : f32 to vector<64x64xf32>
    %80 = arith.select %78, %79, %62 : vector<64x64xi1>, vector<64x64xf32>
    %cst_24 = arith.constant dense<0xFF800000> : vector<64xf32>
    %81 = vector.multi_reduction <maximumf>, %80, %cst_24 [1] : vector<64x64xf32> to vector<64xf32>
    %82 = vector.shape_cast %81 : vector<64xf32> to vector<64x1xf32>
    %83 = vector.broadcast %82 : vector<64x1xf32> to vector<64x64xf32>
    %84 = arith.cmpf oeq, %80, %83 : vector<64x64xf32>
    %cst_25 = arith.constant 6.400000e+01 : f32
    %85 = vector.broadcast %cst_25 : f32 to vector<64x64xf32>
    %86 = arith.select %84, %21, %85 : vector<64x64xi1>, vector<64x64xf32>
    %cst_26 = arith.constant dense<0x7F800000> : vector<64xf32>
    %87 = vector.multi_reduction <minimumf>, %86, %cst_26 [1] : vector<64x64xf32> to vector<64xf32>
    %88 = vector.shape_cast %87 : vector<64xf32> to vector<64x1xf32>
    %c3_i32 = arith.constant 3 : i32
    %89 = vector.broadcast %c3_i32 : i32 to vector<64x8xi32>
    %90 = arith.cmpi eq, %26, %89 : vector<64x8xi32>
    %91 = arith.fptosi %88 : vector<64x1xf32> to vector<64x1xi32>
    %92 = vector.shape_cast %91 : vector<64x1xi32> to vector<64x1xi32>
    %93 = vector.broadcast %92 : vector<64x1xi32> to vector<64x8xi32>
    %94 = arith.select %90, %93, %76 : vector<64x8xi1>, vector<64x8xi32>
    %95 = vector.broadcast %88 : vector<64x1xf32> to vector<64x64xf32>
    %96 = arith.cmpf oeq, %21, %95 : vector<64x64xf32>
    %cst_27 = arith.constant -3.000000e+38 : f32
    %97 = vector.broadcast %cst_27 : f32 to vector<64x64xf32>
    %98 = arith.select %96, %97, %80 : vector<64x64xi1>, vector<64x64xf32>
    %cst_28 = arith.constant dense<0xFF800000> : vector<64xf32>
    %99 = vector.multi_reduction <maximumf>, %98, %cst_28 [1] : vector<64x64xf32> to vector<64xf32>
    %100 = vector.shape_cast %99 : vector<64xf32> to vector<64x1xf32>
    %101 = vector.broadcast %100 : vector<64x1xf32> to vector<64x64xf32>
    %102 = arith.cmpf oeq, %98, %101 : vector<64x64xf32>
    %cst_29 = arith.constant 6.400000e+01 : f32
    %103 = vector.broadcast %cst_29 : f32 to vector<64x64xf32>
    %104 = arith.select %102, %21, %103 : vector<64x64xi1>, vector<64x64xf32>
    %cst_30 = arith.constant dense<0x7F800000> : vector<64xf32>
    %105 = vector.multi_reduction <minimumf>, %104, %cst_30 [1] : vector<64x64xf32> to vector<64xf32>
    %106 = vector.shape_cast %105 : vector<64xf32> to vector<64x1xf32>
    %c4_i32 = arith.constant 4 : i32
    %107 = vector.broadcast %c4_i32 : i32 to vector<64x8xi32>
    %108 = arith.cmpi eq, %26, %107 : vector<64x8xi32>
    %109 = arith.fptosi %106 : vector<64x1xf32> to vector<64x1xi32>
    %110 = vector.shape_cast %109 : vector<64x1xi32> to vector<64x1xi32>
    %111 = vector.broadcast %110 : vector<64x1xi32> to vector<64x8xi32>
    %112 = arith.select %108, %111, %94 : vector<64x8xi1>, vector<64x8xi32>
    %113 = vector.broadcast %106 : vector<64x1xf32> to vector<64x64xf32>
    %114 = arith.cmpf oeq, %21, %113 : vector<64x64xf32>
    %cst_31 = arith.constant -3.000000e+38 : f32
    %115 = vector.broadcast %cst_31 : f32 to vector<64x64xf32>
    %116 = arith.select %114, %115, %98 : vector<64x64xi1>, vector<64x64xf32>
    %cst_32 = arith.constant dense<0xFF800000> : vector<64xf32>
    %117 = vector.multi_reduction <maximumf>, %116, %cst_32 [1] : vector<64x64xf32> to vector<64xf32>
    %118 = vector.shape_cast %117 : vector<64xf32> to vector<64x1xf32>
    %119 = vector.broadcast %118 : vector<64x1xf32> to vector<64x64xf32>
    %120 = arith.cmpf oeq, %116, %119 : vector<64x64xf32>
    %cst_33 = arith.constant 6.400000e+01 : f32
    %121 = vector.broadcast %cst_33 : f32 to vector<64x64xf32>
    %122 = arith.select %120, %21, %121 : vector<64x64xi1>, vector<64x64xf32>
    %cst_34 = arith.constant dense<0x7F800000> : vector<64xf32>
    %123 = vector.multi_reduction <minimumf>, %122, %cst_34 [1] : vector<64x64xf32> to vector<64xf32>
    %124 = vector.shape_cast %123 : vector<64xf32> to vector<64x1xf32>
    %c5_i32 = arith.constant 5 : i32
    %125 = vector.broadcast %c5_i32 : i32 to vector<64x8xi32>
    %126 = arith.cmpi eq, %26, %125 : vector<64x8xi32>
    %127 = arith.fptosi %124 : vector<64x1xf32> to vector<64x1xi32>
    %128 = vector.shape_cast %127 : vector<64x1xi32> to vector<64x1xi32>
    %129 = vector.broadcast %128 : vector<64x1xi32> to vector<64x8xi32>
    %130 = arith.select %126, %129, %112 : vector<64x8xi1>, vector<64x8xi32>
    %131 = vector.broadcast %124 : vector<64x1xf32> to vector<64x64xf32>
    %132 = arith.cmpf oeq, %21, %131 : vector<64x64xf32>
    %cst_35 = arith.constant -3.000000e+38 : f32
    %133 = vector.broadcast %cst_35 : f32 to vector<64x64xf32>
    %134 = arith.select %132, %133, %116 : vector<64x64xi1>, vector<64x64xf32>
    %cst_36 = arith.constant dense<0xFF800000> : vector<64xf32>
    %135 = vector.multi_reduction <maximumf>, %134, %cst_36 [1] : vector<64x64xf32> to vector<64xf32>
    %136 = vector.shape_cast %135 : vector<64xf32> to vector<64x1xf32>
    %137 = vector.broadcast %136 : vector<64x1xf32> to vector<64x64xf32>
    %138 = arith.cmpf oeq, %134, %137 : vector<64x64xf32>
    %cst_37 = arith.constant 6.400000e+01 : f32
    %139 = vector.broadcast %cst_37 : f32 to vector<64x64xf32>
    %140 = arith.select %138, %21, %139 : vector<64x64xi1>, vector<64x64xf32>
    %cst_38 = arith.constant dense<0x7F800000> : vector<64xf32>
    %141 = vector.multi_reduction <minimumf>, %140, %cst_38 [1] : vector<64x64xf32> to vector<64xf32>
    %142 = vector.shape_cast %141 : vector<64xf32> to vector<64x1xf32>
    %c6_i32 = arith.constant 6 : i32
    %143 = vector.broadcast %c6_i32 : i32 to vector<64x8xi32>
    %144 = arith.cmpi eq, %26, %143 : vector<64x8xi32>
    %145 = arith.fptosi %142 : vector<64x1xf32> to vector<64x1xi32>
    %146 = vector.shape_cast %145 : vector<64x1xi32> to vector<64x1xi32>
    %147 = vector.broadcast %146 : vector<64x1xi32> to vector<64x8xi32>
    %148 = arith.select %144, %147, %130 : vector<64x8xi1>, vector<64x8xi32>
    %149 = vector.broadcast %142 : vector<64x1xf32> to vector<64x64xf32>
    %150 = arith.cmpf oeq, %21, %149 : vector<64x64xf32>
    %cst_39 = arith.constant -3.000000e+38 : f32
    %151 = vector.broadcast %cst_39 : f32 to vector<64x64xf32>
    %152 = arith.select %150, %151, %134 : vector<64x64xi1>, vector<64x64xf32>
    %cst_40 = arith.constant dense<0xFF800000> : vector<64xf32>
    %153 = vector.multi_reduction <maximumf>, %152, %cst_40 [1] : vector<64x64xf32> to vector<64xf32>
    %154 = vector.shape_cast %153 : vector<64xf32> to vector<64x1xf32>
    %155 = vector.broadcast %154 : vector<64x1xf32> to vector<64x64xf32>
    %156 = arith.cmpf oeq, %152, %155 : vector<64x64xf32>
    %cst_41 = arith.constant 6.400000e+01 : f32
    %157 = vector.broadcast %cst_41 : f32 to vector<64x64xf32>
    %158 = arith.select %156, %21, %157 : vector<64x64xi1>, vector<64x64xf32>
    %cst_42 = arith.constant dense<0x7F800000> : vector<64xf32>
    %159 = vector.multi_reduction <minimumf>, %158, %cst_42 [1] : vector<64x64xf32> to vector<64xf32>
    %160 = vector.shape_cast %159 : vector<64xf32> to vector<64x1xf32>
    %c7_i32 = arith.constant 7 : i32
    %161 = vector.broadcast %c7_i32 : i32 to vector<64x8xi32>
    %162 = arith.cmpi eq, %26, %161 : vector<64x8xi32>
    %163 = arith.fptosi %160 : vector<64x1xf32> to vector<64x1xi32>
    %164 = vector.shape_cast %163 : vector<64x1xi32> to vector<64x1xi32>
    %165 = vector.broadcast %164 : vector<64x1xi32> to vector<64x8xi32>
    %166 = arith.select %162, %165, %148 : vector<64x8xi1>, vector<64x8xi32>
    %c0_43 = arith.constant 0 : index
    %c0_44 = arith.constant 0 : index
    %c0_45 = arith.constant 0 : index
    %167 = vector.load %arg5[%c0_43, %c0_44, %c0_45] : memref<1x64x8xi32, #tpu.memory_space<vmem>>, vector<1x64x8xi32>
    %168 = vector.shape_cast %167 : vector<1x64x8xi32> to vector<64x8xi32>
    %169 = vector.shape_cast %166 : vector<64x8xi32> to vector<1x64x8xi32>
    tpu.vector_store %arg5[%c0_43, %c0_44, %c0_45], %169 {strides = array<i32>} : memref<1x64x8xi32, #tpu.memory_space<vmem>>, vector<1x64x8xi32>,
    return
  }
  func.func @transform_0(%arg0: i32, %arg1: i32) -> (i32, i32, i32) {
    %c0_i32 = arith.constant 0 : i32
    %c0_i32_0 = arith.constant 0 : i32
    return %arg0, %arg1, %c0_i32 : i32, i32, i32
  }
  func.func @transform_1(%arg0: i32, %arg1: i32) -> (i32, i32, i32) {
    %c0_i32 = arith.constant 0 : i32
    %c0_i32_0 = arith.constant 0 : i32
    %c0_i32_1 = arith.constant 0 : i32
    return %arg0, %c0_i32, %c0_i32_0 : i32, i32, i32
  }
  func.func @transform_2(%arg0: i32, %arg1: i32) -> (i32, i32, i32) {
    %c0_i32 = arith.constant 0 : i32
    %c0_i32_0 = arith.constant 0 : i32
    %c0_i32_1 = arith.constant 0 : i32
    return %arg0, %c0_i32, %c0_i32_0 : i32, i32, i32
  }
  func.func @transform_3(%arg0: i32, %arg1: i32) -> (i32, i32, i32) {
    %c0_i32 = arith.constant 0 : i32
    %c0_i32_0 = arith.constant 0 : i32
    return %arg0, %arg1, %c0_i32 : i32, i32, i32
  }
}

</mosaic_0001>

<bundles_post_ra>
// kernel: tpu_custom_call.1
= control target key start
LH: loop header
LB: loop body
LE: loop exit
PB: predicated region body
PF: predicated region fallthrough
CT: control target
= control target key end

     0   :  { %s1608_s12 = smov 0   ;;  %s1610_s13 = smov 0   ;;  %s2593_s0 = inlined_call_operand.vmem [shape: f32[2,64,3], index: 0, kind: input, shape index: {}]   ;;  %s2594_s1 = inlined_call_operand.vmem [shape: f32[2,3,64], index: 1, kind: input, shape index: {}]   ;;  %s2595_s2 = inlined_call_operand.vmem [shape: f32[2,1,64], index: 2, kind: input, shape index: {}]   ;;  %s2596_s3 = inlined_call_operand.vmem [shape: s32[2,64,8], index: 3, kind: output, shape index: {}]  }
   0x1   :  { %s1612_s14 = smov 0  }
   0x2 LB: > { %s25_s15 = sadd.s32 1, %s1582_s13  ;;  %p1367_p0 = scmp.ge.s32.totalorder %s1586_s14, 1  ;;  %s1586_s14 = sphi %s1612_s14, %s13_s14   ;;  %s1582_s13 = sphi %s1610_s13, %s2598_s13   ;;  %s1578_s12 = sphi %s1608_s12, %s2597_s12  }
   0x3   : > { %p27_p1 = scmp.ge.s32.totalorder %s25_s15, 2  ;;  %p175_p2 = scmp.lt.s32.totalorder %s1586_s14, 3 }
   0x5   : > { %s2600_s15 = smov (%p27_p1, %s25_s15), 0  ;;  %p176_p3 = pnand %p1367_p0, %p175_p2 }
   0x6   : > { %p215_p4 = scmp.lt.s32.totalorder (!%p176_p3), %s1578_s12, 1 }
   0x7   : > { %179 = sbr.rel (%p176_p3) target bundleno = 2495 (0x9bf), region = 32 }
   0xc   : > { %s2602_s12 = smov (!%p215_p4, %s1578_s12), 1  ;;  %vm275_vm0 = vcmask 1042432   ;;  %vm250_vm1 = vcmask 23552   ;;  %v448_v27 = vlaneseq  ;;  %vm485_vm3 = vcmask 523264  }
   0xd   : > { %s1385_s16 = sshll.u32 %s2602_s12, 6  ;;  %s1370_s17 = sshll.u32 %s2602_s12, 2 }
   0xe   : > { %s222_s20 = scalar_lea.vmem %s2593_s0, %s1385_s16  ;;  %s227_s23 = scalar_lea.vmem %s2594_s1, %s1370_s17  ;;  %v1658_v28 = vshrl.u32 %v448_v27, 7  ;;  %v1665_v33 = vand.u32 127, %v448_v27 }
   0xf   : > { %v249_v0 = vld [vmem:[%s227_s23] sm:$0x7]  ;;  %v242_v2 = vld [vmem:[%s222_s20 + $0x8] sm:$0xff]  ;;  %v243_v6 = vld [vmem:[%s222_s20 + $0x10] sm:$0xff]  ;;  %s230_s26 = scalar_lea.vmem %s2595_s2, %s2602_s12  ;;  %s2503_s29 = scalar_lea.vmem %s2596_s3, %s1385_s16 }
  0x10   : > { %v241_v1 = vld [vmem:[%s222_s20] sm:$0xff]  ;;  %1396 = vmatprep.subr.msk.mxu0 %vm275_vm0, %v249_v0  ;;  %1410 = vmatprep.subr.msk.mxu1 %vm275_vm0, %v249_v0  ;;  %v246_v5 = vld [vmem:[%s222_s20 + $0x28] sm:$0xff]  ;;  %v244_v7 = vld [vmem:[%s222_s20 + $0x18] sm:$0xff]  ;;  %v385_v8 = vmul.f32 %v242_v2, %v242_v2  ;;  %v386_v10 = vmul.f32 %v243_v6, %v243_v6  ;;  %v450_v32 = vadd.s32 8, %v1658_v28  ;;  %v454_v38 = vadd.s32 40, %v1658_v28 }
  0x11   : > { %1398 = vmatprep.mubr.msk.f32.mxu0 %vm250_vm1, %v241_v1  ;;  %v384_v3 = vmul.f32 %v241_v1, %v241_v1  ;;  %v245_v4 = vld [vmem:[%s222_s20 + $0x20] sm:$0xff]  ;;  %1397 = vmatpush3.msk.msra.mxu0 %vm275_vm0, %v249_v0  ;;  %v247_v9 = vld [vmem:[%s222_s20 + $0x30] sm:$0xff]  ;;  %v387_v12 = vmul.f32 %v244_v7, %v244_v7  ;;  %v248_v15 = vld [vmem:[%s222_s20 + $0x38] sm:$0xff]  ;;  %v389_v18 = vmul.f32 %v246_v5, %v246_v5  ;;  %v453_v39 = vadd.s32 32, %v1658_v28 }
  0x12   : > { %1399 = vmatmul.mubr.msk.f32.vlgmr.msra.gmra.mxu0 %vm250_vm1, %v242_v2  ;;  %1411 = vmatpush3.msk.msra.mxu1 %vm275_vm0, %v249_v0  ;;  %v398_v13 = vsel %vm250_vm1, %v386_v10, 0.0  ;;  %v388_v14 = vmul.f32 %v245_v4, %v245_v4  ;;  %v395_v16 = vsel %vm250_vm1, %v385_v8, 0.0  ;;  %v390_v20 = vmul.f32 %v247_v9, %v247_v9  ;;  %v1382_v35 = vld [vmem:[%s230_s26] ss:$0 sm:$0xff] }
  0x13   : > { %v392_v11 = vsel %vm250_vm1, %v384_v3, 0.0  ;;  %1404 = vmatprep.mubr.msk.f32.mxu1 %vm250_vm1, %v245_v4  ;;  %1401 = vmatprep.mubr.msk.f32.mxu0 %vm250_vm1, %v243_v6  ;;  %v401_v17 = vsel %vm250_vm1, %v387_v12, 0.0  ;;  %v407_v21 = vsel %vm250_vm1, %v389_v18, 0.0  ;;  %v391_v22 = vmul.f32 %v248_v15, %v248_v15 }
  0x14   : > { %1405 = vmatmul.mubr.msk.f32.vlgmr.msra.gmra.mxu1 %vm250_vm1, %v246_v5  ;;  %393 = vadd.xlane.f32.xlu0 %v392_v11  ;;  %v404_v19 = vsel %vm250_vm1, %v388_v14, 0.0  ;;  %v410_v23 = vsel %vm250_vm1, %v390_v20, 0.0  ;;  %vm470_vm2 = vcmp.eq.s32.totalorder %v450_v32, %v1665_v33  ;;  %vm469_vm4 = vcmp.eq.s32.totalorder %v1658_v28, %v1665_v33 }
  0x15   : > { %1407 = vmatprep.mubr.msk.f32.mxu1 %vm250_vm1, %v247_v9  ;;  %399 = vadd.xlane.f32.xlu1 %v398_v13  ;;  %v413_v24 = vsel %vm250_vm1, %v391_v22, 0.0  ;;  %v452_v47 = vadd.s32 24, %v1658_v28  ;;  %vm474_vm5 = vcmp.eq.s32.totalorder %v454_v38, %v1665_v33  ;;  %vm473_vm6 = vcmp.eq.s32.totalorder %v453_v39, %v1665_v33 }
  0x16   : > { %1402 = vmatmul.mubr.msk.f32.gmra.mxu0 %vm250_vm1, %v244_v7  ;;  %v451_v55 = vadd.s32 16, %v1658_v28  ;;  %v456_v1 = vadd.s32 56, %v1658_v28 }
  0x17   : > { %vm472_vm7 = vcmp.eq.s32.totalorder %v452_v47, %v1665_v33 }
  0x18   : > { %1408 = vmatmul.mubr.msk.f32.gmra.mxu1 %vm250_vm1, %v248_v15  ;;  %396 = vadd.xlane.f32.xlu0 %v395_v16  ;;  %vm471_vm8 = vcmp.eq.s32.totalorder %v451_v55, %v1665_v33  ;;  %vm476_vm9 = vcmp.eq.s32.totalorder %v456_v1, %v1665_v33 }
  0x19   : > { %402 = vadd.xlane.f32.xlu1 %v401_v17  ;;  %v455_v17 = vadd.s32 48, %v1658_v28  ;;  %v1724_v28 = vcvt.s32.f32 %v1665_v33 }
  0x1b   : > { %vm475_vm10 = vcmp.eq.s32.totalorder %v455_v17, %v1665_v33 }
  0x1c   : > { %405 = vadd.xlane.f32.xlu0 %v404_v19 }
  0x1d   : > { %408 = vadd.xlane.f32.xlu1 %v407_v21 }
  0x20   : > { %411 = vadd.xlane.f32.xlu0 %v410_v23 }
  0x21   : > { %414 = vadd.xlane.f32.xlu1 %v413_v24 }
  0x9d   : > { %v394_v26 = vpop.xlane.xlu0 %393 }
  0x9e   : > { %v400_v25 = vpop.xlane.xlu1 %399 }
  0xa1   : > { %v397_v30 = vpop.xlane.xlu0 %396 }
  0xa2   : > { %v403_v29 = vpop.xlane.xlu1 %402 }
  0xa5   : > { %v406_v44 = vpop.xlane.xlu0 %405 }
  0xa6   : > { %v409_v43 = vpop.xlane.xlu1 %408 }
  0xa9   : > { %v412_v6 = vpop.xlane.xlu0 %411 }
  0xaa   : > { %v415_v60 = vpop.xlane.xlu1 %414 }
  0xd2   : > { %v1400_v31 = vpop.f32.mrf.mxu0 }
  0xd3   : > { %v418_v34 = vmul.f32 2.0, %v1400_v31 }
  0xd4   : > { %v1406_v36 = vpop.f32.mrf.mxu1  ;;  %v345_v37 = vpop.f32.mrf.mxu0 }
  0xd5   : > { %v422_v40 = vmul.f32 2.0, %v1406_v36  ;;  %v426_v41 = vsub.f32 %v418_v34, %v397_v30  ;;  %v417_v42 = vmul.f32 2.0, %v345_v37 }
  0xd6   : > { %v1403_v45 = vpop.f32.mrf.mxu0  ;;  %v365_v46 = vpop.f32.mrf.mxu1 }
  0xd7   : > { %v440_v48 = vsub.f32 %v426_v41, %v1382_v35  ;;  %v425_v49 = vsub.f32 %v417_v42, %v394_v26  ;;  %v420_v50 = vmul.f32 2.0, %v1403_v45  ;;  %v421_v51 = vmul.f32 2.0, %v365_v46 }
  0xd8   : > { %v430_v52 = vsub.f32 %v422_v40, %v409_v43  ;;  %v355_v53 = vpop.f32.mrf.mxu0  ;;  %v1409_v54 = vpop.f32.mrf.mxu1 }
  0xd9   : > { %v439_v56 = vsub.f32 %v425_v49, %v1382_v35  ;;  %v428_v57 = vsub.f32 %v420_v50, %v403_v29  ;;  %v429_v58 = vsub.f32 %v421_v51, %v406_v44  ;;  %v419_v59 = vmul.f32 2.0, %v355_v53 }
  0xda   : > { %v444_v61 = vsub.f32 %v430_v52, %v1382_v35  ;;  %v1678_v62 = vsel %vm470_vm2, -3e+38, %v440_v48  ;;  %v424_v63 = vmul.f32 2.0, %v1409_v54  ;;  %v375_v0 = vpop.f32.mrf.mxu1 }
  0xdb   : > { %v442_v2 = vsub.f32 %v428_v57, %v1382_v35  ;;  %v443_v3 = vsub.f32 %v429_v58, %v1382_v35  ;;  %v427_v4 = vsub.f32 %v419_v59, %v400_v25  ;;  %v489_v5 = vsel %vm485_vm3, %v1678_v62, -inf }
  0xdc   : > { %490 = vmax.xlane.f32.xlu1 %v489_v5  ;;  %v1686_v7 = vsel %vm469_vm4, -3e+38, %v439_v56  ;;  %v423_v8 = vmul.f32 2.0, %v375_v0  ;;  %v1690_v9 = vsel %vm474_vm5, -3e+38, %v444_v61  ;;  %v432_v10 = vsub.f32 %v424_v63, %v415_v60 }
  0xdd   : > { %v486_v11 = vsel %vm485_vm3, %v1686_v7, -inf  ;;  %v501_v12 = vsel %vm485_vm3, %v1690_v9, -inf  ;;  %v441_v13 = vsub.f32 %v427_v4, %v1382_v35  ;;  %v1699_v16 = vsel %vm473_vm6, -3e+38, %v443_v3 }
  0xde   : > { %487 = vmax.xlane.f32.xlu0 %v486_v11  ;;  %v446_v14 = vsub.f32 %v432_v10, %v1382_v35  ;;  %v431_v15 = vsub.f32 %v423_v8, %v412_v6  ;;  %v1704_v18 = vsel %vm472_vm7, -3e+38, %v442_v2  ;;  %v498_v19 = vsel %vm485_vm3, %v1699_v16, -inf }
  0xdf   : > { %v1708_v21 = vsel %vm471_vm8, -3e+38, %v441_v13  ;;  %v495_v23 = vsel %vm485_vm3, %v1704_v18, -inf }
  0xe0   : > { %502 = vmax.xlane.f32.xlu1 %v501_v12  ;;  %v445_v20 = vsub.f32 %v431_v15, %v1382_v35  ;;  %v1710_v22 = vsel %vm476_vm9, -3e+38, %v446_v14  ;;  %v492_v24 = vsel %vm485_vm3, %v1708_v21, -inf }
  0xe1   : > { %v507_v25 = vsel %vm485_vm3, %v1710_v22, -inf }
  0xe2   : > { %499 = vmax.xlane.f32.xlu0 %v498_v19  ;;  %v1719_v26 = vsel %vm475_vm10, -3e+38, %v445_v20 }
  0xe3   : > { %v504_v27 = vsel %vm485_vm3, %v1719_v26, -inf }
  0xe4   : > { %496 = vmax.xlane.f32.xlu1 %v495_v23 }
  0xe6   : > { %493 = vmax.xlane.f32.xlu0 %v492_v24 }
  0xe8   : > { %508 = vmax.xlane.f32.xlu1 %v507_v25 }
  0xea   : > { %505 = vmax.xlane.f32.xlu0 %v504_v27 }
 0x165   : > { %v491_v29 = vpop.xlane.xlu1 %490 }
 0x166   : > { %vm511_vm11 = vcmp.eq.f32.partialorder %v1678_v62, %v491_v29 }
 0x167   : > { %v488_v30 = vpop.xlane.xlu0 %487  ;;  %v519_v31 = vsel %vm511_vm11, %v1724_v28, 64.0 }
 0x168   : > { %vm510_vm12 = vcmp.eq.f32.partialorder %v1686_v7, %v488_v30  ;;  %v529_v32 = vsel %vm485_vm3, %v519_v31, inf }
 0x169   : > { %v503_v34 = vpop.xlane.xlu1 %502  ;;  %530 = vmin.xlane.f32.xlu1 %v529_v32  ;;  %v518_v35 = vsel %vm510_vm12, %v1724_v28, 64.0 }
 0x16a   : > { %vm515_vm13 = vcmp.eq.f32.partialorder %v1690_v9, %v503_v34  ;;  %v526_v36 = vsel %vm485_vm3, %v518_v35, inf }
 0x16b   : > { %v500_v37 = vpop.xlane.xlu0 %499  ;;  %527 = vmin.xlane.f32.xlu0 %v526_v36  ;;  %v523_v38 = vsel %vm515_vm13, %v1724_v28, 64.0 }
 0x16c   : > { %vm514_vm14 = vcmp.eq.f32.partialorder %v1699_v16, %v500_v37  ;;  %v541_v39 = vsel %vm485_vm3, %v523_v38, inf }
 0x16d   : > { %542 = vmin.xlane.f32.xlu1 %v541_v39  ;;  %v497_v40 = vpop.xlane.xlu1 %496  ;;  %v522_v41 = vsel %vm514_vm14, %v1724_v28, 64.0 }
 0x16e   : > { %vm513_vm15 = vcmp.eq.f32.partialorder %v1704_v18, %v497_v40  ;;  %v538_v42 = vsel %vm485_vm3, %v522_v41, inf }
 0x16f   : > { %539 = vmin.xlane.f32.xlu0 %v538_v42  ;;  %v494_v43 = vpop.xlane.xlu0 %493  ;;  %v521_v44 = vsel %vm513_vm15, %v1724_v28, 64.0 }
 0x170   : > { %vm512_vm0 = vcmp.eq.f32.partialorder %v1708_v21, %v494_v43  ;;  %v535_v45 = vsel %vm485_vm3, %v521_v44, inf }
 0x171   : > { %536 = vmin.xlane.f32.xlu1 %v535_v45  ;;  %v509_v46 = vpop.xlane.xlu1 %508  ;;  %v520_v47 = vsel %vm512_vm0, %v1724_v28, 64.0 }
 0x172   : > { %vm517_vm1 = vcmp.eq.f32.partialorder %v1710_v22, %v509_v46  ;;  %v532_v48 = vsel %vm485_vm3, %v520_v47, inf }
 0x173   : > { %533 = vmin.xlane.f32.xlu0 %v532_v48  ;;  %v506_v49 = vpop.xlane.xlu0 %505  ;;  %v525_v50 = vsel %vm517_vm1, %v1724_v28, 64.0 }
 0x174   : > { %vm516_vm2 = vcmp.eq.f32.partialorder %v1719_v26, %v506_v49  ;;  %v547_v51 = vsel %vm485_vm3, %v525_v50, inf }
 0x175   : > { %548 = vmin.xlane.f32.xlu1 %v547_v51  ;;  %v524_v52 = vsel %vm516_vm2, %v1724_v28, 64.0 }
 0x176   : > { %v544_v53 = vsel %vm485_vm3, %v524_v52, inf }
 0x177   : > { %545 = vmin.xlane.f32.xlu0 %v544_v53 }
 0x1f2   : > { %v1750_v54 = vpop.xlane.xlu1 %530 }
 0x1f3   : > { %vm568_vm4 = vcmp.eq.f32.partialorder %v1724_v28, %v1750_v54 }
 0x1f4   : > { %v1754_v55 = vpop.xlane.xlu0 %527  ;;  %v1757_v56 = vsel %vm568_vm4, -3e+38, %v1678_v62 }
 0x1f5   : > { %vm567_vm5 = vcmp.eq.f32.partialorder %v1724_v28, %v1754_v55  ;;  %v586_v57 = vsel %vm485_vm3, %v1757_v56, -inf }
 0x1f6   : > { %587 = vmax.xlane.f32.xlu1 %v586_v57  ;;  %v1763_v58 = vpop.xlane.xlu1 %542  ;;  %v1766_v59 = vsel %vm567_vm5, -3e+38, %v1686_v7 }
 0x1f7   : > { %vm572_vm6 = vcmp.eq.f32.partialorder %v1724_v28, %v1763_v58  ;;  %v583_v60 = vsel %vm485_vm3, %v1766_v59, -inf }
 0x1f8   : > { %v1772_v61 = vpop.xlane.xlu0 %539  ;;  %v1775_v62 = vsel %vm572_vm6, -3e+38, %v1690_v9  ;;  %584 = vmax.xlane.f32.xlu0 %v583_v60 }
 0x1f9   : > { %vm571_vm7 = vcmp.eq.f32.partialorder %v1724_v28, %v1772_v61  ;;  %v598_v63 = vsel %vm485_vm3, %v1775_v62, -inf }
 0x1fa   : > { %v1781_v0 = vpop.xlane.xlu1 %536  ;;  %v1784_v1 = vsel %vm571_vm7, -3e+38, %v1699_v16  ;;  %599 = vmax.xlane.f32.xlu1 %v598_v63 }
 0x1fb   : > { %vm570_vm8 = vcmp.eq.f32.partialorder %v1724_v28, %v1781_v0  ;;  %v595_v2 = vsel %vm485_vm3, %v1784_v1, -inf }
 0x1fc   : > { %v1790_v3 = vpop.xlane.xlu0 %533  ;;  %v1793_v4 = vsel %vm570_vm8, -3e+38, %v1704_v18  ;;  %596 = vmax.xlane.f32.xlu0 %v595_v2 }
 0x1fd   : > { %vm569_vm9 = vcmp.eq.f32.partialorder %v1724_v28, %v1790_v3  ;;  %v592_v5 = vsel %vm485_vm3, %v1793_v4, -inf }
 0x1fe   : > { %v1799_v6 = vpop.xlane.xlu1 %548  ;;  %v1802_v7 = vsel %vm569_vm9, -3e+38, %v1708_v21  ;;  %593 = vmax.xlane.f32.xlu1 %v592_v5 }
 0x1ff   : > { %vm574_vm10 = vcmp.eq.f32.partialorder %v1724_v28, %v1799_v6  ;;  %v589_v8 = vsel %vm485_vm3, %v1802_v7, -inf }
 0x200   : > { %v1808_v9 = vpop.xlane.xlu0 %545  ;;  %v1811_v10 = vsel %vm574_vm10, -3e+38, %v1710_v22  ;;  %590 = vmax.xlane.f32.xlu0 %v589_v8 }
 0x201   : > { %vm573_vm11 = vcmp.eq.f32.partialorder %v1724_v28, %v1808_v9  ;;  %v604_v11 = vsel %vm485_vm3, %v1811_v10, -inf }
 0x202   : > { %v1818_v12 = vsel %vm573_vm11, -3e+38, %v1719_v26  ;;  %605 = vmax.xlane.f32.xlu1 %v604_v11 }
 0x203   : > { %v601_v13 = vsel %vm485_vm3, %v1818_v12, -inf }
 0x204   : > { %602 = vmax.xlane.f32.xlu0 %v601_v13 }
 0x27f   : > { %v588_v14 = vpop.xlane.xlu1 %587 }
 0x280   : > { %vm608_vm12 = vcmp.eq.f32.partialorder %v1757_v56, %v588_v14 }
 0x281   : > { %v616_v15 = vsel %vm608_vm12, %v1724_v28, 64.0  ;;  %v585_v16 = vpop.xlane.xlu0 %584 }
 0x282   : > { %v626_v17 = vsel %vm485_vm3, %v616_v15, inf  ;;  %vm607_vm13 = vcmp.eq.f32.partialorder %v1766_v59, %v585_v16 }
 0x283   : > { %627 = vmin.xlane.f32.xlu1 %v626_v17  ;;  %v600_v18 = vpop.xlane.xlu1 %599  ;;  %v615_v19 = vsel %vm607_vm13, %v1724_v28, 64.0 }
 0x284   : > { %vm612_vm14 = vcmp.eq.f32.partialorder %v1775_v62, %v600_v18  ;;  %v623_v20 = vsel %vm485_vm3, %v615_v19, inf }
 0x285   : > { %624 = vmin.xlane.f32.xlu0 %v623_v20  ;;  %v597_v21 = vpop.xlane.xlu0 %596  ;;  %v620_v22 = vsel %vm612_vm14, %v1724_v28, 64.0 }
 0x286   : > { %vm611_vm15 = vcmp.eq.f32.partialorder %v1784_v1, %v597_v21  ;;  %v638_v23 = vsel %vm485_vm3, %v620_v22, inf }
 0x287   : > { %639 = vmin.xlane.f32.xlu1 %v638_v23  ;;  %v594_v24 = vpop.xlane.xlu1 %593  ;;  %v619_v25 = vsel %vm611_vm15, %v1724_v28, 64.0 }
 0x288   : > { %vm610_vm0 = vcmp.eq.f32.partialorder %v1793_v4, %v594_v24  ;;  %v635_v26 = vsel %vm485_vm3, %v619_v25, inf }
 0x289   : > { %636 = vmin.xlane.f32.xlu0 %v635_v26  ;;  %v591_v27 = vpop.xlane.xlu0 %590  ;;  %v618_v29 = vsel %vm610_vm0, %v1724_v28, 64.0 }
 0x28a   : > { %vm609_vm1 = vcmp.eq.f32.partialorder %v1802_v7, %v591_v27  ;;  %v632_v30 = vsel %vm485_vm3, %v618_v29, inf }
 0x28b   : > { %633 = vmin.xlane.f32.xlu1 %v632_v30  ;;  %v606_v31 = vpop.xlane.xlu1 %605  ;;  %v617_v32 = vsel %vm609_vm1, %v1724_v28, 64.0 }
 0x28c   : > { %vm614_vm2 = vcmp.eq.f32.partialorder %v1811_v10, %v606_v31  ;;  %v629_v34 = vsel %vm485_vm3, %v617_v32, inf }
 0x28d   : > { %630 = vmin.xlane.f32.xlu0 %v629_v34  ;;  %v603_v35 = vpop.xlane.xlu0 %602  ;;  %v622_v36 = vsel %vm614_vm2, %v1724_v28, 64.0 }
 0x28e   : > { %vm613_vm4 = vcmp.eq.f32.partialorder %v1818_v12, %v603_v35  ;;  %v644_v37 = vsel %vm485_vm3, %v622_v36, inf }
 0x28f   : > { %645 = vmin.xlane.f32.xlu1 %v644_v37  ;;  %v621_v38 = vsel %vm613_vm4, %v1724_v28, 64.0 }
 0x290   : > { %v641_v39 = vsel %vm485_vm3, %v621_v38, inf }
 0x291   : > { %642 = vmin.xlane.f32.xlu0 %v641_v39 }
 0x30c   : > { %v1846_v40 = vpop.xlane.xlu1 %627 }
 0x30d   : > { %vm665_vm5 = vcmp.eq.f32.partialorder %v1724_v28, %v1846_v40 }
 0x30e   : > { %v1851_v41 = vsel %vm665_vm5, -3e+38, %v1757_v56  ;;  %v1853_v42 = vpop.xlane.xlu0 %624 }
 0x30f   : > { %v683_v43 = vsel %vm485_vm3, %v1851_v41, -inf  ;;  %vm664_vm6 = vcmp.eq.f32.partialorder %v1724_v28, %v1853_v42 }
 0x310   : > { %684 = vmax.xlane.f32.xlu1 %v683_v43  ;;  %v1859_v44 = vpop.xlane.xlu1 %639  ;;  %v1862_v45 = vsel %vm664_vm6, -3e+38, %v1766_v59 }
 0x311   : > { %vm669_vm7 = vcmp.eq.f32.partialorder %v1724_v28, %v1859_v44  ;;  %v680_v46 = vsel %vm485_vm3, %v1862_v45, -inf }
 0x312   : > { %681 = vmax.xlane.f32.xlu0 %v680_v46  ;;  %v1868_v47 = vpop.xlane.xlu0 %636  ;;  %v1871_v48 = vsel %vm669_vm7, -3e+38, %v1775_v62 }
 0x313   : > { %vm668_vm8 = vcmp.eq.f32.partialorder %v1724_v28, %v1868_v47  ;;  %v695_v49 = vsel %vm485_vm3, %v1871_v48, -inf }
 0x314   : > { %v1877_v50 = vpop.xlane.xlu1 %633  ;;  %v1880_v51 = vsel %vm668_vm8, -3e+38, %v1784_v1  ;;  %696 = vmax.xlane.f32.xlu1 %v695_v49 }
 0x315   : > { %vm667_vm9 = vcmp.eq.f32.partialorder %v1724_v28, %v1877_v50  ;;  %v692_v52 = vsel %vm485_vm3, %v1880_v51, -inf }
 0x316   : > { %v1886_v53 = vpop.xlane.xlu0 %630  ;;  %v1889_v56 = vsel %vm667_vm9, -3e+38, %v1793_v4  ;;  %693 = vmax.xlane.f32.xlu0 %v692_v52 }
 0x317   : > { %vm666_vm10 = vcmp.eq.f32.partialorder %v1724_v28, %v1886_v53  ;;  %v689_v57 = vsel %vm485_vm3, %v1889_v56, -inf }
 0x318   : > { %v1895_v59 = vpop.xlane.xlu1 %645  ;;  %v1898_v60 = vsel %vm666_vm10, -3e+38, %v1802_v7  ;;  %690 = vmax.xlane.f32.xlu1 %v689_v57 }
 0x319   : > { %vm671_vm11 = vcmp.eq.f32.partialorder %v1724_v28, %v1895_v59  ;;  %v686_v62 = vsel %vm485_vm3, %v1898_v60, -inf }
 0x31a   : > { %v1904_v63 = vpop.xlane.xlu0 %642  ;;  %v1907_v1 = vsel %vm671_vm11, -3e+38, %v1811_v10  ;;  %687 = vmax.xlane.f32.xlu0 %v686_v62 }
 0x31b   : > { %vm670_vm12 = vcmp.eq.f32.partialorder %v1724_v28, %v1904_v63  ;;  %v701_v2 = vsel %vm485_vm3, %v1907_v1, -inf }
 0x31c   : > { %v1914_v4 = vsel %vm670_vm12, -3e+38, %v1818_v12  ;;  %702 = vmax.xlane.f32.xlu1 %v701_v2 }
 0x31d   : > { %v698_v5 = vsel %vm485_vm3, %v1914_v4, -inf }
 0x31e   : > { %699 = vmax.xlane.f32.xlu0 %v698_v5 }
 0x399   : > { %v685_v7 = vpop.xlane.xlu1 %684 }
 0x39a   : > { %vm705_vm13 = vcmp.eq.f32.partialorder %v1851_v41, %v685_v7 }
 0x39b   : > { %v713_v8 = vsel %vm705_vm13, %v1724_v28, 64.0  ;;  %v682_v10 = vpop.xlane.xlu0 %681 }
 0x39c   : > { %v723_v11 = vsel %vm485_vm3, %v713_v8, inf  ;;  %vm704_vm14 = vcmp.eq.f32.partialorder %v1862_v45, %v682_v10 }
 0x39d   : > { %724 = vmin.xlane.f32.xlu1 %v723_v11  ;;  %v712_v13 = vsel %vm704_vm14, %v1724_v28, 64.0  ;;  %v697_v12 = vpop.xlane.xlu1 %696 }
 0x39e   : > { %v720_v14 = vsel %vm485_vm3, %v712_v13, inf  ;;  %vm709_vm15 = vcmp.eq.f32.partialorder %v1871_v48, %v697_v12 }
 0x39f   : > { %721 = vmin.xlane.f32.xlu0 %v720_v14  ;;  %v694_v15 = vpop.xlane.xlu0 %693  ;;  %v717_v16 = vsel %vm709_vm15, %v1724_v28, 64.0 }
 0x3a0   : > { %vm708_vm0 = vcmp.eq.f32.partialorder %v1880_v51, %v694_v15  ;;  %v735_v17 = vsel %vm485_vm3, %v717_v16, inf }
 0x3a1   : > { %736 = vmin.xlane.f32.xlu1 %v735_v17  ;;  %v691_v18 = vpop.xlane.xlu1 %690  ;;  %v716_v19 = vsel %vm708_vm0, %v1724_v28, 64.0 }
 0x3a2   : > { %vm707_vm1 = vcmp.eq.f32.partialorder %v1889_v56, %v691_v18  ;;  %v732_v20 = vsel %vm485_vm3, %v716_v19, inf }
 0x3a3   : > { %733 = vmin.xlane.f32.xlu0 %v732_v20  ;;  %v688_v21 = vpop.xlane.xlu0 %687  ;;  %v715_v22 = vsel %vm707_vm1, %v1724_v28, 64.0 }
 0x3a4   : > { %vm706_vm2 = vcmp.eq.f32.partialorder %v1898_v60, %v688_v21  ;;  %v729_v23 = vsel %vm485_vm3, %v715_v22, inf }
 0x3a5   : > { %730 = vmin.xlane.f32.xlu1 %v729_v23  ;;  %v703_v24 = vpop.xlane.xlu1 %702  ;;  %v714_v25 = vsel %vm706_vm2, %v1724_v28, 64.0 }
 0x3a6   : > { %vm711_vm4 = vcmp.eq.f32.partialorder %v1907_v1, %v703_v24  ;;  %v726_v26 = vsel %vm485_vm3, %v714_v25, inf }
 0x3a7   : > { %727 = vmin.xlane.f32.xlu0 %v726_v26  ;;  %v700_v27 = vpop.xlane.xlu0 %699  ;;  %v719_v29 = vsel %vm711_vm4, %v1724_v28, 64.0 }
 0x3a8   : > { %vm710_vm5 = vcmp.eq.f32.partialorder %v1914_v4, %v700_v27  ;;  %v741_v30 = vsel %vm485_vm3, %v719_v29, inf }
 0x3a9   : > { %742 = vmin.xlane.f32.xlu1 %v741_v30  ;;  %v718_v31 = vsel %vm710_vm5, %v1724_v28, 64.0 }
 0x3aa   : > { %v738_v32 = vsel %vm485_vm3, %v718_v31, inf }
 0x3ab   : > { %739 = vmin.xlane.f32.xlu0 %v738_v32 }
 0x426   : > { %v1942_v34 = vpop.xlane.xlu1 %724 }
 0x427   : > { %vm762_vm6 = vcmp.eq.f32.partialorder %v1724_v28, %v1942_v34 }
 0x428   : > { %v1947_v35 = vsel %vm762_vm6, -3e+38, %v1851_v41  ;;  %v1949_v36 = vpop.xlane.xlu0 %721 }
 0x429   : > { %v780_v37 = vsel %vm485_vm3, %v1947_v35, -inf  ;;  %vm761_vm7 = vcmp.eq.f32.partialorder %v1724_v28, %v1949_v36 }
 0x42a   : > { %781 = vmax.xlane.f32.xlu1 %v780_v37  ;;  %v1956_v38 = vsel %vm761_vm7, -3e+38, %v1862_v45  ;;  %v1958_v39 = vpop.xlane.xlu1 %736  ;;  %vm550_vm7 = vcmp.eq.s32.totalorder %v1665_v33, 0 }
 0x42b   : > { %v777_v43 = vsel %vm485_vm3, %v1956_v38, -inf  ;;  %vm766_vm8 = vcmp.eq.f32.partialorder %v1724_v28, %v1958_v39 }
 0x42c   : > { %778 = vmax.xlane.f32.xlu0 %v777_v43  ;;  %v1964_v41 = vpop.xlane.xlu0 %733  ;;  %v1967_v46 = vsel %vm766_vm8, -3e+38, %v1871_v48  ;;  %vm647_vm8 = vcmp.eq.s32.totalorder %v1665_v33, 1 }
 0x42d   : > { %vm765_vm9 = vcmp.eq.f32.partialorder %v1724_v28, %v1964_v41  ;;  %v792_v45 = vsel %vm485_vm3, %v1967_v46, -inf }
 0x42e   : > { %793 = vmax.xlane.f32.xlu1 %v792_v45  ;;  %v1973_v49 = vpop.xlane.xlu1 %730  ;;  %v1976_v52 = vsel %vm765_vm9, -3e+38, %v1880_v51  ;;  %v1414_v45 = vtrunc.f32 %v1750_v54  ;;  %v1416_v54 = vtrunc.f32 %v1790_v3  ;;  %v1438_v3 = vtrunc.f32 %v1859_v44 }
 0x42f   : > { %vm764_vm10 = vcmp.eq.f32.partialorder %v1724_v28, %v1973_v49  ;;  %v789_v57 = vsel %vm485_vm3, %v1976_v52, -inf  ;;  %vm744_vm9 = vcmp.eq.s32.totalorder %v1665_v33, 2 }
 0x430   : > { %v1982_v48 = vpop.xlane.xlu0 %727  ;;  %v1985_v62 = vsel %vm764_vm10, -3e+38, %v1889_v56  ;;  %790 = vmax.xlane.f32.xlu0 %v789_v57  ;;  %v1412_v57 = vtrunc.f32 %v1754_v55 }
 0x431   : > { %vm763_vm11 = vcmp.eq.f32.partialorder %v1724_v28, %v1982_v48  ;;  %v786_v2 = vsel %vm485_vm3, %v1985_v62, -inf }
 0x432   : > { %v1991_v51 = vpop.xlane.xlu1 %742  ;;  %v1994_v5 = vsel %vm763_vm11, -3e+38, %v1898_v60  ;;  %787 = vmax.xlane.f32.xlu1 %v786_v2  ;;  %v1422_v2 = vtrunc.f32 %v1763_v58  ;;  %v1446_v58 = vtrunc.f32 %v1942_v34  ;;  %vm841_vm11 = vcmp.eq.s32.totalorder %v1665_v33, 3 }
 0x433   : > { %vm768_vm12 = vcmp.eq.f32.partialorder %v1724_v28, %v1991_v51  ;;  %v783_v56 = vsel %vm485_vm3, %v1994_v5, -inf }
 0x434   : > { %v2000_v7 = vpop.xlane.xlu0 %739  ;;  %v2003_v8 = vsel %vm768_vm12, -3e+38, %v1907_v1  ;;  %784 = vmax.xlane.f32.xlu0 %v783_v56  ;;  %v1420_v56 = vtrunc.f32 %v1772_v61 }
 0x435   : > { %vm767_vm13 = vcmp.eq.f32.partialorder %v1724_v28, %v2000_v7  ;;  %v798_v60 = vsel %vm485_vm3, %v2003_v8, -inf }
 0x436   : > { %v2010_v10 = vsel %vm767_vm13, -3e+38, %v1914_v4  ;;  %799 = vmax.xlane.f32.xlu1 %v798_v60  ;;  %v1418_v60 = vtrunc.f32 %v1781_v0 }
 0x437   : > { %v795_v11 = vsel %vm485_vm3, %v2010_v10, -inf }
 0x438   : > { %796 = vmax.xlane.f32.xlu0 %v795_v11  ;;  %v1430_v11 = vtrunc.f32 %v1846_v40 }
 0x43a   : > { %v1431_v55 = vcvt.f32.s32 %v1430_v11 }
 0x4b3   : > { %v782_v13 = vpop.xlane.xlu1 %781 }
 0x4b4   : > { %vm802_vm14 = vcmp.eq.f32.partialorder %v1947_v35, %v782_v13  ;;  %v1415_v13 = vcvt.f32.s32 %v1414_v45  ;;  %v1432_v45 = vtrunc.f32 %v1886_v53 }
 0x4b5   : > { %v810_v1 = vsel %vm802_vm14, %v1724_v28, 64.0  ;;  %v779_v12 = vpop.xlane.xlu0 %778 }
 0x4b6   : > { %v820_v14 = vsel %vm485_vm3, %v810_v1, inf  ;;  %vm801_vm15 = vcmp.eq.f32.partialorder %v1956_v38, %v779_v12  ;;  %v1413_v1 = vcvt.f32.s32 %v1412_v57  ;;  %v1428_v12 = vtrunc.f32 %v1853_v42 }
 0x4b7   : > { %821 = vmin.xlane.f32.xlu1 %v820_v14  ;;  %v809_v15 = vsel %vm801_vm15, %v1724_v28, 64.0  ;;  %v794_v4 = vpop.xlane.xlu1 %793  ;;  %v1423_v14 = vcvt.f32.s32 %v1422_v2  ;;  %v560_v61 = vsel %vm550_vm7, %v1415_v13, 0 }
 0x4b8   : > { %v817_v16 = vsel %vm485_vm3, %v809_v15, inf  ;;  %vm806_vm0 = vcmp.eq.f32.partialorder %v1967_v46, %v794_v4  ;;  %v1421_v15 = vcvt.f32.s32 %v1420_v56  ;;  %v1419_v4 = vcvt.f32.s32 %v1418_v60 }
 0x4b9   : > { %818 = vmin.xlane.f32.xlu0 %v817_v16  ;;  %v814_v17 = vsel %vm806_vm0, %v1724_v28, 64.0  ;;  %v791_v18 = vpop.xlane.xlu0 %790  ;;  %v559_v0 = vsel %vm550_vm7, %v1413_v1, 0  ;;  %v1429_v40 = vcvt.f32.s32 %v1428_v12  ;;  %v564_v42 = vsel %vm550_vm7, %v1423_v14, 0 }
 0x4ba   : > { %v832_v19 = vsel %vm485_vm3, %v814_v17, inf  ;;  %vm805_vm1 = vcmp.eq.f32.partialorder %v1976_v52, %v791_v18  ;;  %v563_v16 = vsel %vm550_vm7, %v1421_v15, 0  ;;  %v1444_v17 = vtrunc.f32 %v1949_v36 }
 0x4bb   : > { %833 = vmin.xlane.f32.xlu1 %v832_v19  ;;  %v788_v20 = vpop.xlane.xlu1 %787  ;;  %v813_v21 = vsel %vm805_vm1, %v1724_v28, 64.0  ;;  %v562_v34 = vsel %vm550_vm7, %v1419_v4, 0  ;;  %v2061_v18 = vcvt.f32.s32 %v1416_v54  ;;  %v657_v19 = vsel %vm647_vm8, %v1431_v55, %v560_v61 }
 0x4bc   : > { %vm804_vm2 = vcmp.eq.f32.partialorder %v1985_v62, %v788_v20  ;;  %v829_v22 = vsel %vm485_vm3, %v813_v21, inf  ;;  %v1447_v20 = vcvt.f32.s32 %v1446_v58  ;;  %v656_v44 = vsel %vm647_vm8, %v1429_v40, %v559_v0 }
 0x4bd   : > { %830 = vmin.xlane.f32.xlu0 %v829_v22  ;;  %v785_v23 = vpop.xlane.xlu0 %784  ;;  %v812_v24 = vsel %vm804_vm2, %v1724_v28, 64.0  ;;  %v1436_v22 = vtrunc.f32 %v1868_v47  ;;  %v1454_v36 = vtrunc.f32 %v1958_v39  ;;  %v1448_v14 = vtrunc.f32 %v1982_v48 }
 0x4be   : > { %vm803_vm4 = vcmp.eq.f32.partialorder %v1994_v5, %v785_v23  ;;  %v826_v25 = vsel %vm485_vm3, %v812_v24, inf }
 0x4bf   : > { %827 = vmin.xlane.f32.xlu1 %v826_v25  ;;  %v800_v26 = vpop.xlane.xlu1 %799  ;;  %v811_v27 = vsel %vm803_vm4, %v1724_v28, 64.0  ;;  %v1439_v25 = vcvt.f32.s32 %v1438_v3  ;;  %v1437_v39 = vcvt.f32.s32 %v1436_v22 }
 0x4c0   : > { %vm808_vm5 = vcmp.eq.f32.partialorder %v2003_v8, %v800_v26  ;;  %v823_v29 = vsel %vm485_vm3, %v811_v27, inf  ;;  %v1445_v26 = vcvt.f32.s32 %v1444_v17 }
 0x4c1   : > { %824 = vmin.xlane.f32.xlu0 %v823_v29  ;;  %v797_v30 = vpop.xlane.xlu0 %796  ;;  %v816_v31 = vsel %vm808_vm5, %v1724_v28, 64.0  ;;  %v660_v54 = vsel %vm647_vm8, %v1437_v39, %v563_v16 }
 0x4c2   : > { %vm807_vm6 = vcmp.eq.f32.partialorder %v2010_v10, %v797_v30  ;;  %v838_v32 = vsel %vm485_vm3, %v816_v31, inf  ;;  %v1434_v30 = vtrunc.f32 %v1877_v50  ;;  %v754_v31 = vsel %vm744_vm9, %v1447_v20, %v657_v19 }
 0x4c3   : > { %839 = vmin.xlane.f32.xlu1 %v838_v32  ;;  %v815_v37 = vsel %vm807_vm6, %v1724_v28, 64.0  ;;  %v1455_v50 = vcvt.f32.s32 %v1454_v36  ;;  %v753_v60 = vsel %vm744_vm9, %v1445_v26, %v656_v44  ;;  %v1449_v20 = vcvt.f32.s32 %v1448_v14 }
 0x4c4   : > { %v835_v43 = vsel %vm485_vm3, %v815_v37, inf  ;;  %v1435_v13 = vcvt.f32.s32 %v1434_v30 }
 0x4c5   : > { %836 = vmin.xlane.f32.xlu0 %v835_v43 }
 0x4c6   : > { %v659_v17 = vsel %vm647_vm8, %v1435_v13, %v562_v34  ;;  %v561_v34 = vsel %vm550_vm7, %v2061_v18, 0 }
 0x540   : > { %v822_v21 = vpop.xlane.xlu1 %821 }
 0x541   : > { %v1462_v23 = vtrunc.f32 %v822_v21  ;;  %vm859_vm10 = vcmp.eq.f32.partialorder %v1724_v28, %v822_v21 }
 0x542   : > { %v2073_v24 = vsel %vm859_vm10, -3e+38, %v1947_v35  ;;  %v819_v29 = vpop.xlane.xlu0 %818  ;;  %v1452_v35 = vtrunc.f32 %v1964_v41  ;;  %v1450_v41 = vtrunc.f32 %v1973_v49 }
 0x543   : > { %v1463_v27 = vcvt.f32.s32 %v1462_v23  ;;  %v877_v47 = vsel %vm485_vm3, %v2073_v24, -inf  ;;  %v1460_v32 = vtrunc.f32 %v819_v29  ;;  %vm858_vm12 = vcmp.eq.f32.partialorder %v1724_v28, %v819_v29 }
 0x544   : > { %878 = vmax.xlane.f32.xlu1 %v877_v47  ;;  %v2087_v43 = vsel %vm858_vm12, -3e+38, %v1956_v38  ;;  %v834_v2 = vpop.xlane.xlu1 %833  ;;  %v661_v38 = vsel %vm647_vm8, %v1439_v25, %v564_v42  ;;  %v1453_v12 = vcvt.f32.s32 %v1452_v35  ;;  %v1451_v61 = vcvt.f32.s32 %v1450_v41 }
 0x545   : > { %v2084_v37 = vsel %vm841_vm11, %v1463_v27, %v754_v31  ;;  %v1461_v57 = vcvt.f32.s32 %v1460_v32  ;;  %v874_v56 = vsel %vm485_vm3, %v2087_v43, -inf  ;;  %v1470_v11 = vtrunc.f32 %v834_v2 }
 0x546   : > { %vm863_vm13 = vcmp.eq.f32.partialorder %v1724_v28, %v834_v2  ;;  %875 = vmax.xlane.f32.xlu0 %v874_v56  ;;  %v831_v49 = vpop.xlane.xlu0 %830  ;;  %v758_v55 = vsel %vm744_vm9, %v1455_v50, %v661_v38  ;;  %v757_v19 = vsel %vm744_vm9, %v1453_v12, %v660_v54  ;;  %v756_v36 = vsel %vm744_vm9, %v1451_v61, %v659_v17 }
 0x547   : > { %v2100_v53 = vsel %vm841_vm11, %v1461_v57, %v753_v60  ;;  %v2103_v1 = vsel %vm863_vm13, -3e+38, %v1967_v46  ;;  %v1471_v15 = vcvt.f32.s32 %v1470_v11  ;;  %v1468_v58 = vtrunc.f32 %v831_v49 }
 0x548   : > { %v889_v4 = vsel %vm485_vm3, %v2103_v1, -inf  ;;  %vm862_vm14 = vcmp.eq.f32.partialorder %v1724_v28, %v831_v49  ;;  %v1433_v46 = vcvt.f32.s32 %v1432_v45  ;;  %v828_v0 = vpop.xlane.xlu1 %827 }
 0x549   : > { %890 = vmax.xlane.f32.xlu1 %v889_v4  ;;  %v2115_v48 = vsel %vm841_vm11, %v1471_v15, %v758_v55  ;;  %v2118_v40 = vsel %vm862_vm14, -3e+38, %v1976_v52  ;;  %v1469_v42 = vcvt.f32.s32 %v1468_v58  ;;  %v1466_v3 = vtrunc.f32 %v828_v0 }
 0x54a   : > { %vm861_vm15 = vcmp.eq.f32.partialorder %v1724_v28, %v828_v0  ;;  %v886_v16 = vsel %vm485_vm3, %v2118_v40, -inf  ;;  %v825_v21 = vpop.xlane.xlu0 %824  ;;  %v658_v27 = vsel %vm647_vm8, %v1433_v46, %v561_v34 }
 0x54b   : > { %887 = vmax.xlane.f32.xlu0 %v886_v16  ;;  %v2128_v22 = vsel %vm861_vm15, -3e+38, %v1985_v62  ;;  %v2132_v52 = vsel %vm841_vm11, %v1469_v42, %v757_v19  ;;  %v1467_v23 = vcvt.f32.s32 %v1466_v3  ;;  %v1464_v44 = vtrunc.f32 %v825_v21 }
 0x54c   : > { %vm860_vm0 = vcmp.eq.f32.partialorder %v1724_v28, %v825_v21  ;;  %v883_v25 = vsel %vm485_vm3, %v2128_v22, -inf  ;;  %v2142_v62 = vpop.xlane.xlu1 %839  ;;  %v755_v18 = vsel %vm744_vm9, %v1449_v20, %v658_v27 }
 0x54d   : > { %v2145_v26 = vsel %vm860_vm0, -3e+38, %v1994_v5  ;;  %v2151_v29 = vsel %vm841_vm11, %v1467_v23, %v756_v36  ;;  %v1465_v47 = vcvt.f32.s32 %v1464_v44  ;;  %884 = vmax.xlane.f32.xlu1 %v883_v25  ;;  %vm865_vm1 = vcmp.eq.f32.partialorder %v1724_v28, %v2142_v62 }
 0x54e   : > { %v880_v30 = vsel %vm485_vm3, %v2145_v26, -inf  ;;  %v2159_v5 = vpop.xlane.xlu0 %836  ;;  %v2162_v31 = vsel %vm865_vm1, -3e+38, %v2003_v8  ;;  %vm938_vm1 = vcmp.eq.s32.totalorder %v1665_v33, 4 }
 0x54f   : > { %v2166_v32 = vsel %vm841_vm11, %v1465_v47, %v755_v18  ;;  %881 = vmax.xlane.f32.xlu0 %v880_v30  ;;  %vm864_vm2 = vcmp.eq.f32.partialorder %v1724_v28, %v2159_v5  ;;  %v895_v39 = vsel %vm485_vm3, %v2162_v31, -inf }
 0x550   : > { %v2173_v35 = vsel %vm864_vm2, -3e+38, %v2010_v10 }
 0x551   : > { %896 = vmax.xlane.f32.xlu1 %v895_v39  ;;  %v892_v45 = vsel %vm485_vm3, %v2173_v35, -inf }
 0x553   : > { %893 = vmax.xlane.f32.xlu0 %v892_v45 }
 0x5cd   : > { %v879_v8 = vpop.xlane.xlu1 %878 }
 0x5ce   : > { %vm899_vm4 = vcmp.eq.f32.partialorder %v2073_v24, %v879_v8 }
 0x5cf   : > { %v907_v50 = vsel %vm899_vm4, %v1724_v28, 64.0  ;;  %v876_v57 = vpop.xlane.xlu0 %875 }
 0x5d0   : > { %v917_v2 = vsel %vm485_vm3, %v907_v50, inf  ;;  %vm898_vm5 = vcmp.eq.f32.partialorder %v2087_v43, %v876_v57 }
 0x5d1   : > { %918 = vmin.xlane.f32.xlu1 %v917_v2  ;;  %v906_v56 = vsel %vm898_vm5, %v1724_v28, 64.0 }
 0x5d2   : > { %v891_v10 = vpop.xlane.xlu1 %890  ;;  %v914_v60 = vsel %vm485_vm3, %v906_v56, inf }
 0x5d3   : > { %vm903_vm6 = vcmp.eq.f32.partialorder %v2103_v1, %v891_v10  ;;  %915 = vmin.xlane.f32.xlu0 %v914_v60 }
 0x5d4   : > { %v911_v41 = vsel %vm903_vm6, %v1724_v28, 64.0  ;;  %v888_v11 = vpop.xlane.xlu0 %887 }
 0x5d5   : > { %v929_v38 = vsel %vm485_vm3, %v911_v41, inf  ;;  %vm902_vm10 = vcmp.eq.f32.partialorder %v2118_v40, %v888_v11 }
 0x5d6   : > { %930 = vmin.xlane.f32.xlu1 %v929_v38  ;;  %v910_v13 = vsel %vm902_vm10, %v1724_v28, 64.0  ;;  %v885_v12 = vpop.xlane.xlu1 %884 }
 0x5d7   : > { %v926_v14 = vsel %vm485_vm3, %v910_v13, inf  ;;  %vm901_vm12 = vcmp.eq.f32.partialorder %v2128_v22, %v885_v12 }
 0x5d8   : > { %927 = vmin.xlane.f32.xlu0 %v926_v14  ;;  %v882_v15 = vpop.xlane.xlu0 %881  ;;  %v909_v49 = vsel %vm901_vm12, %v1724_v28, 64.0 }
 0x5d9   : > { %vm900_vm13 = vcmp.eq.f32.partialorder %v2145_v26, %v882_v15  ;;  %v923_v4 = vsel %vm485_vm3, %v909_v49, inf }
 0x5da   : > { %924 = vmin.xlane.f32.xlu1 %v923_v4  ;;  %v897_v54 = vpop.xlane.xlu1 %896  ;;  %v908_v55 = vsel %vm900_vm13, %v1724_v28, 64.0 }
 0x5db   : > { %vm905_vm14 = vcmp.eq.f32.partialorder %v2162_v31, %v897_v54  ;;  %v920_v58 = vsel %vm485_vm3, %v908_v55, inf }
 0x5dc   : > { %921 = vmin.xlane.f32.xlu0 %v920_v58  ;;  %v894_v46 = vpop.xlane.xlu0 %893  ;;  %v913_v61 = vsel %vm905_vm14, %v1724_v28, 64.0 }
 0x5dd   : > { %vm904_vm15 = vcmp.eq.f32.partialorder %v2173_v35, %v894_v46  ;;  %v935_v0 = vsel %vm485_vm3, %v913_v61, inf }
 0x5de   : > { %936 = vmin.xlane.f32.xlu1 %v935_v0  ;;  %v912_v42 = vsel %vm904_vm15, %v1724_v28, 64.0 }
 0x5df   : > { %v932_v3 = vsel %vm485_vm3, %v912_v42, inf }
 0x5e0   : > { %933 = vmin.xlane.f32.xlu0 %v932_v3 }
 0x65a   : > { %v919_v16 = vpop.xlane.xlu1 %918 }
 0x65b   : > { %v1478_v17 = vtrunc.f32 %v919_v16  ;;  %vm956_vm0 = vcmp.eq.f32.partialorder %v1724_v28, %v919_v16 }
 0x65c   : > { %v2204_v19 = vsel %vm956_vm0, -3e+38, %v2073_v24  ;;  %v916_v21 = vpop.xlane.xlu0 %915 }
 0x65d   : > { %v1479_v20 = vcvt.f32.s32 %v1478_v17  ;;  %v974_v23 = vsel %vm485_vm3, %v2204_v19, -inf  ;;  %v1476_v44 = vtrunc.f32 %v916_v21  ;;  %vm955_vm2 = vcmp.eq.f32.partialorder %v1724_v28, %v916_v21 }
 0x65e   : > { %975 = vmax.xlane.f32.xlu1 %v974_v23  ;;  %v2215_v36 = vsel %vm955_vm2, -3e+38, %v2087_v43 }
 0x65f   : > { %v2212_v34 = vsel %vm938_vm1, %v1479_v20, %v2084_v37  ;;  %v1477_v25 = vcvt.f32.s32 %v1476_v44  ;;  %v931_v24 = vpop.xlane.xlu1 %930  ;;  %v971_v27 = vsel %vm485_vm3, %v2215_v36, -inf }
 0x660   : > { %v1486_v47 = vtrunc.f32 %v931_v24  ;;  %vm960_vm4 = vcmp.eq.f32.partialorder %v1724_v28, %v931_v24  ;;  %972 = vmax.xlane.f32.xlu0 %v971_v27 }
 0x661   : > { %v2223_v18 = vsel %vm938_vm1, %v1477_v25, %v2100_v53  ;;  %v2226_v37 = vsel %vm960_vm4, -3e+38, %v2103_v1  ;;  %v928_v43 = vpop.xlane.xlu0 %927 }
 0x662   : > { %v1487_v30 = vcvt.f32.s32 %v1486_v47  ;;  %v986_v39 = vsel %vm485_vm3, %v2226_v37, -inf  ;;  %v1484_v45 = vtrunc.f32 %v928_v43  ;;  %vm959_vm5 = vcmp.eq.f32.partialorder %v1724_v28, %v928_v43 }
 0x663   : > { %987 = vmax.xlane.f32.xlu1 %v986_v39  ;;  %v2237_v53 = vsel %vm959_vm5, -3e+38, %v2118_v40  ;;  %v925_v1 = vpop.xlane.xlu1 %924 }
 0x664   : > { %v2234_v8 = vsel %vm938_vm1, %v1487_v30, %v2115_v48  ;;  %v1485_v50 = vcvt.f32.s32 %v1484_v45  ;;  %v983_v57 = vsel %vm485_vm3, %v2237_v53, -inf  ;;  %v1482_v2 = vtrunc.f32 %v925_v1 }
 0x665   : > { %vm958_vm6 = vcmp.eq.f32.partialorder %v1724_v28, %v925_v1  ;;  %984 = vmax.xlane.f32.xlu0 %v983_v57  ;;  %v922_v10 = vpop.xlane.xlu0 %921 }
 0x666   : > { %v2245_v56 = vsel %vm938_vm1, %v1485_v50, %v2132_v52  ;;  %v2248_v48 = vsel %vm958_vm6, -3e+38, %v2128_v22  ;;  %v1483_v40 = vcvt.f32.s32 %v1482_v2  ;;  %v1480_v60 = vtrunc.f32 %v922_v10 }
 0x667   : > { %vm957_vm10 = vcmp.eq.f32.partialorder %v1724_v28, %v922_v10  ;;  %v980_v41 = vsel %vm485_vm3, %v2248_v48, -inf  ;;  %v2253_v11 = vpop.xlane.xlu1 %936 }
 0x668   : > { %981 = vmax.xlane.f32.xlu1 %v980_v41  ;;  %v2256_v38 = vsel %vm957_vm10, -3e+38, %v2145_v26  ;;  %v2261_v52 = vsel %vm938_vm1, %v1483_v40, %v2151_v29  ;;  %v1481_v22 = vcvt.f32.s32 %v1480_v60  ;;  %vm962_vm12 = vcmp.eq.f32.partialorder %v1724_v28, %v2253_v11 }
 0x669   : > { %v977_v13 = vsel %vm485_vm3, %v2256_v38, -inf  ;;  %v2267_v12 = vpop.xlane.xlu0 %933  ;;  %v2270_v14 = vsel %vm962_vm12, -3e+38, %v2162_v31 }
 0x66a   : > { %v2275_v26 = vsel %vm938_vm1, %v1481_v22, %v2166_v32  ;;  %978 = vmax.xlane.f32.xlu0 %v977_v13  ;;  %vm961_vm13 = vcmp.eq.f32.partialorder %v1724_v28, %v2267_v12  ;;  %v992_v29 = vsel %vm485_vm3, %v2270_v14, -inf }
 0x66b   : > { %v2282_v15 = vsel %vm961_vm13, -3e+38, %v2173_v35  ;;  %vm1035_vm13 = vcmp.eq.s32.totalorder %v1665_v33, 5 }
 0x66c   : > { %993 = vmax.xlane.f32.xlu1 %v992_v29  ;;  %v989_v31 = vsel %vm485_vm3, %v2282_v15, -inf }
 0x66e   : > { %990 = vmax.xlane.f32.xlu0 %v989_v31 }
 0x6e7   : > { %v976_v49 = vpop.xlane.xlu1 %975 }
 0x6e8   : > { %vm996_vm14 = vcmp.eq.f32.partialorder %v2204_v19, %v976_v49 }
 0x6e9   : > { %v1004_v32 = vsel %vm996_vm14, %v1724_v28, 64.0  ;;  %v973_v4 = vpop.xlane.xlu0 %972 }
 0x6ea   : > { %v1014_v54 = vsel %vm485_vm3, %v1004_v32, inf  ;;  %vm995_vm15 = vcmp.eq.f32.partialorder %v2215_v36, %v973_v4 }
 0x6eb   : > { %1015 = vmin.xlane.f32.xlu1 %v1014_v54  ;;  %v1003_v55 = vsel %vm995_vm15, %v1724_v28, 64.0 }
 0x6ec   : > { %v988_v35 = vpop.xlane.xlu1 %987  ;;  %v1011_v58 = vsel %vm485_vm3, %v1003_v55, inf }
 0x6ed   : > { %vm1000_vm0 = vcmp.eq.f32.partialorder %v2226_v37, %v988_v35  ;;  %1012 = vmin.xlane.f32.xlu0 %v1011_v58 }
 0x6ee   : > { %v1008_v46 = vsel %vm1000_vm0, %v1724_v28, 64.0  ;;  %v985_v61 = vpop.xlane.xlu0 %984 }
 0x6ef   : > { %v1026_v0 = vsel %vm485_vm3, %v1008_v46, inf  ;;  %vm999_vm2 = vcmp.eq.f32.partialorder %v2237_v53, %v985_v61 }
 0x6f0   : > { %1027 = vmin.xlane.f32.xlu1 %v1026_v0  ;;  %v1007_v42 = vsel %vm999_vm2, %v1724_v28, 64.0 }
 0x6f1   : > { %v982_v3 = vpop.xlane.xlu1 %981  ;;  %v1023_v16 = vsel %vm485_vm3, %v1007_v42, inf }
 0x6f2   : > { %vm998_vm4 = vcmp.eq.f32.partialorder %v2248_v48, %v982_v3  ;;  %1024 = vmin.xlane.f32.xlu0 %v1023_v16 }
 0x6f3   : > { %v1006_v17 = vsel %vm998_vm4, %v1724_v28, 64.0  ;;  %v979_v20 = vpop.xlane.xlu0 %978 }
 0x6f4   : > { %v1020_v21 = vsel %vm485_vm3, %v1006_v17, inf  ;;  %vm997_vm5 = vcmp.eq.f32.partialorder %v2256_v38, %v979_v20 }
 0x6f5   : > { %1021 = vmin.xlane.f32.xlu1 %v1020_v21  ;;  %v1005_v23 = vsel %vm997_vm5, %v1724_v28, 64.0  ;;  %v994_v44 = vpop.xlane.xlu1 %993 }
 0x6f6   : > { %vm1002_vm6 = vcmp.eq.f32.partialorder %v2270_v14, %v994_v44  ;;  %v1017_v25 = vsel %vm485_vm3, %v1005_v23, inf }
 0x6f7   : > { %v1010_v24 = vsel %vm1002_vm6, %v1724_v28, 64.0  ;;  %1018 = vmin.xlane.f32.xlu0 %v1017_v25  ;;  %v991_v27 = vpop.xlane.xlu0 %990 }
 0x6f8   : > { %vm1001_vm10 = vcmp.eq.f32.partialorder %v2282_v15, %v991_v27  ;;  %v1032_v47 = vsel %vm485_vm3, %v1010_v24, inf }
 0x6f9   : > { %v1009_v30 = vsel %vm1001_vm10, %v1724_v28, 64.0  ;;  %1033 = vmin.xlane.f32.xlu1 %v1032_v47 }
 0x6fa   : > { %v1029_v43 = vsel %vm485_vm3, %v1009_v30, inf }
 0x6fb   : > { %1030 = vmin.xlane.f32.xlu0 %v1029_v43 }
 0x774   : > { %v1016_v39 = vpop.xlane.xlu1 %1015 }
 0x775   : > { %v1494_v45 = vtrunc.f32 %v1016_v39  ;;  %vm1053_vm12 = vcmp.eq.f32.partialorder %v1724_v28, %v1016_v39 }
 0x776   : > { %v2313_v50 = vsel %vm1053_vm12, -3e+38, %v2204_v19  ;;  %v1013_v57 = vpop.xlane.xlu0 %1012 }
 0x777   : > { %v1495_v1 = vcvt.f32.s32 %v1494_v45  ;;  %v1071_v2 = vsel %vm485_vm3, %v2313_v50, -inf  ;;  %v1492_v10 = vtrunc.f32 %v1013_v57  ;;  %vm1052_vm14 = vcmp.eq.f32.partialorder %v1724_v28, %v1013_v57 }
 0x778   : > { %1072 = vmax.xlane.f32.xlu1 %v1071_v2  ;;  %v2324_v60 = vsel %vm1052_vm14, -3e+38, %v2215_v36 }
 0x779   : > { %v2321_v40 = vsel %vm1035_vm13, %v1495_v1, %v2212_v34  ;;  %v1493_v41 = vcvt.f32.s32 %v1492_v10  ;;  %v1028_v19 = vpop.xlane.xlu1 %1027  ;;  %v1068_v22 = vsel %vm485_vm3, %v2324_v60, -inf }
 0x77a   : > { %v1502_v13 = vtrunc.f32 %v1028_v19  ;;  %vm1057_vm15 = vcmp.eq.f32.partialorder %v1724_v28, %v1028_v19  ;;  %1069 = vmax.xlane.f32.xlu0 %v1068_v22 }
 0x77b   : > { %v2332_v29 = vsel %vm1035_vm13, %v1493_v41, %v2223_v18  ;;  %v2335_v34 = vsel %vm1057_vm15, -3e+38, %v2226_v37  ;;  %v1025_v36 = vpop.xlane.xlu0 %1024 }
 0x77c   : > { %v1503_v31 = vcvt.f32.s32 %v1502_v13  ;;  %v1083_v49 = vsel %vm485_vm3, %v2335_v34, -inf  ;;  %v1500_v32 = vtrunc.f32 %v1025_v36  ;;  %vm1056_vm0 = vcmp.eq.f32.partialorder %v1724_v28, %v1025_v36 }
 0x77d   : > { %1084 = vmax.xlane.f32.xlu1 %v1083_v49  ;;  %v2346_v18 = vsel %vm1056_vm0, -3e+38, %v2237_v53 }
 0x77e   : > { %v2343_v4 = vsel %vm1035_vm13, %v1503_v31, %v2234_v8  ;;  %v1501_v54 = vcvt.f32.s32 %v1500_v32  ;;  %v1022_v37 = vpop.xlane.xlu1 %1021  ;;  %v1080_v55 = vsel %vm485_vm3, %v2346_v18, -inf }
 0x77f   : > { %v1498_v35 = vtrunc.f32 %v1022_v37  ;;  %vm1055_vm2 = vcmp.eq.f32.partialorder %v1724_v28, %v1022_v37  ;;  %1081 = vmax.xlane.f32.xlu0 %v1080_v55 }
 0x780   : > { %v2354_v58 = vsel %vm1035_vm13, %v1501_v54, %v2245_v56  ;;  %v2357_v8 = vsel %vm1055_vm2, -3e+38, %v2248_v48  ;;  %v1019_v53 = vpop.xlane.xlu0 %1018 }
 0x781   : > { %v1499_v46 = vcvt.f32.s32 %v1498_v35  ;;  %v1077_v61 = vsel %vm485_vm3, %v2357_v8, -inf  ;;  %v1496_v0 = vtrunc.f32 %v1019_v53  ;;  %vm1054_vm4 = vcmp.eq.f32.partialorder %v1724_v28, %v1019_v53 }
 0x782   : > { %1078 = vmax.xlane.f32.xlu1 %v1077_v61  ;;  %v2368_v56 = vsel %vm1054_vm4, -3e+38, %v2256_v38  ;;  %v2370_v3 = vpop.xlane.xlu1 %1033 }
 0x783   : > { %v2365_v42 = vsel %vm1035_vm13, %v1499_v46, %v2261_v52  ;;  %v1497_v48 = vcvt.f32.s32 %v1496_v0  ;;  %vm1059_vm5 = vcmp.eq.f32.partialorder %v1724_v28, %v2370_v3  ;;  %v1074_v16 = vsel %vm485_vm3, %v2368_v56, -inf }
 0x784   : > { %v2377_v17 = vsel %vm1059_vm5, -3e+38, %v2270_v14  ;;  %1075 = vmax.xlane.f32.xlu0 %v1074_v16  ;;  %v2379_v20 = vpop.xlane.xlu0 %1030 }
 0x785   : > { %v2384_v38 = vsel %vm1035_vm13, %v1497_v48, %v2275_v26  ;;  %vm1058_vm6 = vcmp.eq.f32.partialorder %v1724_v28, %v2379_v20  ;;  %v1089_v21 = vsel %vm485_vm3, %v2377_v17, -inf }
 0x786   : > { %v2389_v52 = vsel %vm1058_vm6, -3e+38, %v2282_v15  ;;  %1090 = vmax.xlane.f32.xlu1 %v1089_v21 }
 0x787   : > { %v1086_v14 = vsel %vm485_vm3, %v2389_v52, -inf }
 0x788   : > { %1087 = vmax.xlane.f32.xlu0 %v1086_v14 }
 0x801   : > { %v1073_v23 = vpop.xlane.xlu1 %1072 }
 0x802   : > { %vm1093_vm10 = vcmp.eq.f32.partialorder %v2313_v50, %v1073_v23 }
 0x803   : > { %v1101_v26 = vsel %vm1093_vm10, %v1724_v28, 64.0  ;;  %v1070_v44 = vpop.xlane.xlu0 %1069  ;;  %vm1132_vm10 = vcmp.eq.s32.totalorder %v1665_v33, 6 }
 0x804   : > { %v1111_v25 = vsel %vm485_vm3, %v1101_v26, inf  ;;  %vm1092_vm12 = vcmp.eq.f32.partialorder %v2324_v60, %v1070_v44 }
 0x805   : > { %1112 = vmin.xlane.f32.xlu1 %v1111_v25  ;;  %v1100_v15 = vsel %vm1092_vm12, %v1724_v28, 64.0 }
 0x806   : > { %v1085_v24 = vpop.xlane.xlu1 %1084  ;;  %v1108_v27 = vsel %vm485_vm3, %v1100_v15, inf }
 0x807   : > { %vm1097_vm14 = vcmp.eq.f32.partialorder %v2335_v34, %v1085_v24  ;;  %1109 = vmin.xlane.f32.xlu0 %v1108_v27 }
 0x808   : > { %v1105_v47 = vsel %vm1097_vm14, %v1724_v28, 64.0  ;;  %v1082_v30 = vpop.xlane.xlu0 %1081 }
 0x809   : > { %v1123_v43 = vsel %vm485_vm3, %v1105_v47, inf  ;;  %vm1096_vm15 = vcmp.eq.f32.partialorder %v2346_v18, %v1082_v30 }
 0x80a   : > { %1124 = vmin.xlane.f32.xlu1 %v1123_v43  ;;  %v1104_v39 = vsel %vm1096_vm15, %v1724_v28, 64.0 }
 0x80b   : > { %v1079_v45 = vpop.xlane.xlu1 %1078  ;;  %v1120_v1 = vsel %vm485_vm3, %v1104_v39, inf }
 0x80c   : > { %vm1095_vm0 = vcmp.eq.f32.partialorder %v2357_v8, %v1079_v45  ;;  %1121 = vmin.xlane.f32.xlu0 %v1120_v1 }
 0x80d   : > { %v1103_v57 = vsel %vm1095_vm0, %v1724_v28, 64.0  ;;  %v1076_v2 = vpop.xlane.xlu0 %1075 }
 0x80e   : > { %v1117_v10 = vsel %vm485_vm3, %v1103_v57, inf  ;;  %vm1094_vm2 = vcmp.eq.f32.partialorder %v2368_v56, %v1076_v2 }
 0x80f   : > { %1118 = vmin.xlane.f32.xlu1 %v1117_v10  ;;  %v1102_v41 = vsel %vm1094_vm2, %v1724_v28, 64.0  ;;  %v1091_v19 = vpop.xlane.xlu1 %1090 }
 0x810   : > { %v1114_v22 = vsel %vm485_vm3, %v1102_v41, inf  ;;  %vm1099_vm4 = vcmp.eq.f32.partialorder %v2377_v17, %v1091_v19 }
 0x811   : > { %1115 = vmin.xlane.f32.xlu0 %v1114_v22  ;;  %v1088_v13 = vpop.xlane.xlu0 %1087  ;;  %v1107_v31 = vsel %vm1099_vm4, %v1724_v28, 64.0 }
 0x812   : > { %vm1098_vm5 = vcmp.eq.f32.partialorder %v2389_v52, %v1088_v13  ;;  %v1129_v49 = vsel %vm485_vm3, %v1107_v31, inf }
 0x813   : > { %v1106_v36 = vsel %vm1098_vm5, %v1724_v28, 64.0  ;;  %1130 = vmin.xlane.f32.xlu1 %v1129_v49 }
 0x814   : > { %v1126_v32 = vsel %vm485_vm3, %v1106_v36, inf }
 0x815   : > { %1127 = vmin.xlane.f32.xlu0 %v1126_v32 }
 0x88e   : > { %v1113_v54 = vpop.xlane.xlu1 %1112 }
 0x88f   : > { %v1510_v37 = vtrunc.f32 %v1113_v54  ;;  %vm1150_vm6 = vcmp.eq.f32.partialorder %v1724_v28, %v1113_v54 }
 0x890   : > { %v1158_v55 = vsel %vm1150_vm6, -3e+38, %v2313_v50  ;;  %v1110_v46 = vpop.xlane.xlu0 %1109 }
 0x891   : > { %v1511_v35 = vcvt.f32.s32 %v1510_v37  ;;  %v1168_v53 = vsel %vm485_vm3, %v1158_v55, -inf  ;;  %v1508_v61 = vtrunc.f32 %v1110_v46  ;;  %vm1149_vm12 = vcmp.eq.f32.partialorder %v1724_v28, %v1110_v46 }
 0x892   : > { %1169 = vmax.xlane.f32.xlu1 %v1168_v53  ;;  %v1157_v48 = vsel %vm1149_vm12, -3e+38, %v2324_v60 }
 0x893   : > { %v2427_v0 = vsel %vm1132_vm10, %v1511_v35, %v2321_v40  ;;  %v1509_v16 = vcvt.f32.s32 %v1508_v61  ;;  %v1125_v21 = vpop.xlane.xlu1 %1124  ;;  %v1165_v14 = vsel %vm485_vm3, %v1157_v48, -inf }
 0x894   : > { %v1518_v50 = vtrunc.f32 %v1125_v21  ;;  %vm1154_vm14 = vcmp.eq.f32.partialorder %v1724_v28, %v1125_v21  ;;  %1166 = vmax.xlane.f32.xlu0 %v1165_v14 }
 0x895   : > { %v2435_v23 = vsel %vm1132_vm10, %v1509_v16, %v2332_v29  ;;  %v1162_v26 = vsel %vm1154_vm14, -3e+38, %v2335_v34  ;;  %v1122_v40 = vpop.xlane.xlu0 %1121 }
 0x896   : > { %v1519_v44 = vcvt.f32.s32 %v1518_v50  ;;  %v1180_v25 = vsel %vm485_vm3, %v1162_v26, -inf  ;;  %v1516_v60 = vtrunc.f32 %v1122_v40  ;;  %vm1153_vm15 = vcmp.eq.f32.partialorder %v1724_v28, %v1122_v40 }
 0x897   : > { %1181 = vmax.xlane.f32.xlu1 %v1180_v25  ;;  %v1161_v24 = vsel %vm1153_vm15, -3e+38, %v2346_v18 }
 0x898   : > { %v2443_v15 = vsel %vm1132_vm10, %v1519_v44, %v2343_v4  ;;  %v1517_v27 = vcvt.f32.s32 %v1516_v60  ;;  %v1119_v29 = vpop.xlane.xlu1 %1118  ;;  %v1177_v47 = vsel %vm485_vm3, %v1161_v24, -inf }
 0x899   : > { %v1514_v34 = vtrunc.f32 %v1119_v29  ;;  %vm1152_vm0 = vcmp.eq.f32.partialorder %v1724_v28, %v1119_v29  ;;  %1178 = vmax.xlane.f32.xlu0 %v1177_v47 }
 0x89a   : > { %v2451_v30 = vsel %vm1132_vm10, %v1517_v27, %v2354_v58  ;;  %v1160_v43 = vsel %vm1152_vm0, -3e+38, %v2357_v8  ;;  %v1116_v4 = vpop.xlane.xlu0 %1115  ;;  %v1426_v27 = vtrunc.f32 %v1799_v6 }
 0x89b   : > { %v1515_v39 = vcvt.f32.s32 %v1514_v34  ;;  %v1174_v45 = vsel %vm485_vm3, %v1160_v43, -inf  ;;  %v1512_v18 = vtrunc.f32 %v1116_v4  ;;  %vm1151_vm2 = vcmp.eq.f32.partialorder %v1724_v28, %v1116_v4 }
 0x89c   : > { %1175 = vmax.xlane.f32.xlu1 %v1174_v45  ;;  %v1159_v57 = vsel %vm1151_vm2, -3e+38, %v2368_v56  ;;  %v2462_v58 = vpop.xlane.xlu1 %1130 }
 0x89d   : > { %v2459_v1 = vsel %vm1132_vm10, %v1515_v39, %v2365_v42  ;;  %v1513_v2 = vcvt.f32.s32 %v1512_v18  ;;  %v1171_v8 = vsel %vm485_vm3, %v1159_v57, -inf  ;;  %vm1156_vm4 = vcmp.eq.f32.partialorder %v1724_v28, %v2462_v58 }
 0x89e   : > { %1172 = vmax.xlane.f32.xlu0 %v1171_v8  ;;  %v2467_v10 = vpop.xlane.xlu0 %1127  ;;  %v1164_v42 = vsel %vm1156_vm4, -3e+38, %v2377_v17 }
 0x89f   : > { %v2472_v41 = vsel %vm1132_vm10, %v1513_v2, %v2384_v38  ;;  %vm1155_vm5 = vcmp.eq.f32.partialorder %v1724_v28, %v2467_v10  ;;  %v1186_v56 = vsel %vm485_vm3, %v1164_v42, -inf  ;;  %v1440_v2 = vtrunc.f32 %v1904_v63 }
 0x8a0   : > { %v1163_v19 = vsel %vm1155_vm5, -3e+38, %v2389_v52  ;;  %1187 = vmax.xlane.f32.xlu1 %v1186_v56  ;;  %v1458_v56 = vtrunc.f32 %v1991_v51 }
 0x8a1   : > { %v1183_v22 = vsel %vm485_vm3, %v1163_v19, -inf }
 0x8a2   : > { %1184 = vmax.xlane.f32.xlu0 %v1183_v22  ;;  %v1456_v22 = vtrunc.f32 %v2000_v7  ;;  %v1506_v7 = vtrunc.f32 %v2370_v3 }
 0x91b   : > { %v1170_v13 = vpop.xlane.xlu1 %1169 }
 0x91c   : > { %vm1190_vm6 = vcmp.eq.f32.partialorder %v1158_v55, %v1170_v13  ;;  %v1474_v13 = vtrunc.f32 %v2142_v62 }
 0x91d   : > { %v1198_v31 = vsel %vm1190_vm6, %v1724_v28, 64.0  ;;  %v1167_v36 = vpop.xlane.xlu0 %1166  ;;  %vm1229_vm6 = vcmp.eq.s32.totalorder %v1665_v33, 7 }
 0x91e   : > { %v1208_v38 = vsel %vm485_vm3, %v1198_v31, inf  ;;  %vm1189_vm12 = vcmp.eq.f32.partialorder %v1157_v48, %v1167_v36  ;;  %v1472_v31 = vtrunc.f32 %v2159_v5  ;;  %v1490_v36 = vtrunc.f32 %v2253_v11 }
 0x91f   : > { %1209 = vmin.xlane.f32.xlu1 %v1208_v38  ;;  %v1197_v49 = vsel %vm1189_vm12, %v1724_v28, 64.0  ;;  %vm1246_vm12 = vcmask 64512   ;;  %v1457_v11 = vcvt.f32.s32 %v1456_v22 }
 0x920   : > { %v1182_v17 = vpop.xlane.xlu1 %1181  ;;  %v1205_v32 = vsel %vm485_vm3, %v1197_v49, inf  ;;  %v1441_v49 = vcvt.f32.s32 %v1440_v2 }
 0x921   : > { %vm1194_vm14 = vcmp.eq.f32.partialorder %v1162_v26, %v1182_v17  ;;  %1206 = vmin.xlane.f32.xlu0 %v1205_v32  ;;  %v1488_v17 = vtrunc.f32 %v2267_v12  ;;  %v1459_v32 = vcvt.f32.s32 %v1458_v56 }
 0x922   : > { %v1202_v52 = vsel %vm1194_vm14, %v1724_v28, 64.0  ;;  %v1179_v54 = vpop.xlane.xlu0 %1178 }
 0x923   : > { %v1220_v37 = vsel %vm485_vm3, %v1202_v52, inf  ;;  %vm1193_vm15 = vcmp.eq.f32.partialorder %v1161_v24, %v1179_v54  ;;  %v1504_v52 = vtrunc.f32 %v2379_v20  ;;  %v1475_v54 = vcvt.f32.s32 %v1474_v13 }
 0x924   : > { %1221 = vmin.xlane.f32.xlu1 %v1220_v37  ;;  %v1201_v55 = vsel %vm1193_vm15, %v1724_v28, 64.0  ;;  %v1520_v37 = vtrunc.f32 %v2467_v10  ;;  %v1491_v20 = vcvt.f32.s32 %v1490_v36 }
 0x925   : > { %v1176_v35 = vpop.xlane.xlu1 %1175  ;;  %v1217_v46 = vsel %vm485_vm3, %v1201_v55, inf }
 0x926   : > { %vm1192_vm0 = vcmp.eq.f32.partialorder %v1160_v43, %v1176_v35  ;;  %1218 = vmin.xlane.f32.xlu0 %v1217_v46  ;;  %v1427_v43 = vcvt.f32.s32 %v1426_v27  ;;  %v1473_v35 = vcvt.f32.s32 %v1472_v31 }
 0x927   : > { %v1200_v53 = vsel %vm1192_vm0, %v1724_v28, 64.0  ;;  %v1173_v61 = vpop.xlane.xlu0 %1172 }
 0x928   : > { %v1214_v48 = vsel %vm485_vm3, %v1200_v53, inf  ;;  %vm1191_vm2 = vcmp.eq.f32.partialorder %v1159_v57, %v1173_v61  ;;  %v1442_v57 = vtrunc.f32 %v1895_v59  ;;  %v1489_v53 = vcvt.f32.s32 %v1488_v17 }
 0x929   : > { %1215 = vmin.xlane.f32.xlu1 %v1214_v48  ;;  %v1199_v16 = vsel %vm1191_vm2, %v1724_v28, 64.0  ;;  %v1188_v21 = vpop.xlane.xlu1 %1187  ;;  %v1505_v48 = vcvt.f32.s32 %v1504_v52 }
 0x92a   : > { %v1211_v14 = vsel %vm485_vm3, %v1199_v16, inf  ;;  %vm1196_vm4 = vcmp.eq.f32.partialorder %v1164_v42, %v1188_v21  ;;  %v566_v42 = vsel %vm550_vm7, %v1427_v43, 0 }
 0x92b   : > { %1212 = vmin.xlane.f32.xlu0 %v1211_v14  ;;  %v1185_v50 = vpop.xlane.xlu0 %1184  ;;  %v1204_v26 = vsel %vm1196_vm4, %v1724_v28, 64.0 }
 0x92c   : > { %vm1195_vm5 = vcmp.eq.f32.partialorder %v1163_v19, %v1185_v50  ;;  %v1226_v40 = vsel %vm485_vm3, %v1204_v26, inf }
 0x92d   : > { %v1203_v44 = vsel %vm1195_vm5, %v1724_v28, 64.0  ;;  %1227 = vmin.xlane.f32.xlu1 %v1226_v40  ;;  %v1424_v28 = vtrunc.f32 %v1808_v9 }
 0x92e   : > { %v1223_v25 = vsel %vm485_vm3, %v1203_v44, inf  ;;  %v1521_v44 = vcvt.f32.s32 %v1520_v37 }
 0x92f   : > { %1224 = vmin.xlane.f32.xlu0 %v1223_v25  ;;  %v1425_v45 = vcvt.f32.s32 %v1424_v28 }
 0x931   : > { %v565_v59 = vsel %vm550_vm7, %v1425_v45, 0 }
 0x9a8   : > { %v1210_v60 = vpop.xlane.xlu1 %1209 }
 0x9a9   : > { %v1526_v24 = vtrunc.f32 %v1210_v60 }
 0x9aa   : > { %v1207_v47 = vpop.xlane.xlu0 %1206 }
 0x9ab   : > { %v1527_v29 = vcvt.f32.s32 %v1526_v24  ;;  %v1524_v34 = vtrunc.f32 %v1207_v47 }
 0x9ad   : > { %v1239_v6 = vsel %vm1229_vm6, %v1527_v29, %v2427_v0  ;;  %v1525_v39 = vcvt.f32.s32 %v1524_v34  ;;  %v1222_v4 = vpop.xlane.xlu1 %1221 }
 0x9ae   : > { %1248 = vst.msk [vmem:[%s2503_s29 + $0x8] sm:$0xff] %vm1246_vm12, %v1239_v6  ;;  %v1534_v18 = vtrunc.f32 %v1222_v4 }
 0x9af   : > { %v1238_v9 = vsel %vm1229_vm6, %v1525_v39, %v2435_v23  ;;  %v1219_v0 = vpop.xlane.xlu0 %1218  ;;  %v1443_v23 = vcvt.f32.s32 %v1442_v57 }
 0x9b0   : > { %1247 = vst.msk [vmem:[%s2503_s29] sm:$0xff] %vm1246_vm12, %v1238_v9  ;;  %v1535_v8 = vcvt.f32.s32 %v1534_v18  ;;  %v1532_v19 = vtrunc.f32 %v1219_v0 }
 0x9b1   : > { %v663_v3 = vsel %vm647_vm8, %v1443_v23, %v566_v42 }
 0x9b2   : > { %v1243_v63 = vsel %vm1229_vm6, %v1535_v8, %v2443_v15  ;;  %v1533_v51 = vcvt.f32.s32 %v1532_v19  ;;  %v1216_v38 = vpop.xlane.xlu1 %1215  ;;  %v1522_v15 = vtrunc.f32 %v2462_v58  ;;  %v662_v58 = vsel %vm647_vm8, %v1441_v49, %v565_v59 }
 0x9b3   : > { %1252 = vst.msk [vmem:[%s2503_s29 + $0x28] sm:$0xff] %vm1246_vm12, %v1243_v63  ;;  %v1530_v62 = vtrunc.f32 %v1216_v38  ;;  %v760_v10 = vsel %vm744_vm9, %v1459_v32, %v663_v3  ;;  %v759_v50 = vsel %vm744_vm9, %v1457_v11, %v662_v58 }
 0x9b4   : > { %v1242_v5 = vsel %vm1229_vm6, %v1533_v51, %v2451_v30  ;;  %v1213_v55 = vpop.xlane.xlu0 %1212  ;;  %v1507_v30 = vcvt.f32.s32 %v1506_v7  ;;  %v1523_v16 = vcvt.f32.s32 %v1522_v15  ;;  %v857_v26 = vsel %vm841_vm11, %v1475_v54, %v760_v10 }
 0x9b5   : > { %1251 = vst.msk [vmem:[%s2503_s29 + $0x20] sm:$0xff] %vm1246_vm12, %v1242_v5  ;;  %v1531_v12 = vcvt.f32.s32 %v1530_v62  ;;  %v1528_v46 = vtrunc.f32 %v1213_v55  ;;  %v856_v25 = vsel %vm841_vm11, %v1473_v35, %v759_v50  ;;  %v954_v60 = vsel %vm938_vm1, %v1491_v20, %v857_v26 }
 0x9b6   : > { %v1228_v14 = vpop.xlane.xlu1 %1227  ;;  %v953_v28 = vsel %vm938_vm1, %v1489_v53, %v856_v25  ;;  %v1051_v29 = vsel %vm1035_vm13, %v1507_v30, %v954_v60 }
 0x9b7   : > { %v1241_v61 = vsel %vm1229_vm6, %v1531_v12, %v2459_v1  ;;  %v1529_v21 = vcvt.f32.s32 %v1528_v46  ;;  %v1538_v40 = vtrunc.f32 %v1228_v14  ;;  %v1050_v34 = vsel %vm1035_vm13, %v1505_v48, %v953_v28 }
 0x9b8   : > { %1250 = vst.msk [vmem:[%s2503_s29 + $0x18] sm:$0xff] %vm1246_vm12, %v1241_v61  ;;  %v1225_v1 = vpop.xlane.xlu0 %1224  ;;  %v1148_v6 = vsel %vm1132_vm10, %v1523_v16, %v1051_v29 }
 0x9b9   : > { %v1240_v24 = vsel %vm1229_vm6, %v1529_v21, %v2472_v41  ;;  %v1536_v27 = vtrunc.f32 %v1225_v1  ;;  %v1539_v47 = vcvt.f32.s32 %v1538_v40  ;;  %v1147_v41 = vsel %vm1132_vm10, %v1521_v44, %v1050_v34 }
 0x9ba   : > { %1249 = vst.msk [vmem:[%s2503_s29 + $0x10] sm:$0xff] %vm1246_vm12, %v1240_v24 }
 0x9bb   : > { %v1537_v43 = vcvt.f32.s32 %v1536_v27  ;;  %v1245_v39 = vsel %vm1229_vm6, %v1539_v47, %v1148_v6 }
 0x9bc   : > { %1254 = vst.msk [vmem:[%s2503_s29 + $0x38] sm:$0xff] %vm1246_vm12, %v1245_v39 }
 0x9bd   : > { %v1244_v4 = vsel %vm1229_vm6, %v1537_v43, %v1147_v41 }
 0x9be   : > { %1253 = vst.msk [vmem:[%s2503_s29 + $0x30] sm:$0xff] %vm1246_vm12, %v1244_v4 }
 0x9bf PF: > { %s13_s14 = sadd.s32 1, %s1586_s14   ;;  %s2597_s12 = smov %s1582_s13 }
 0x9c0   : > { %p10_p5 = scmp.ge.s32.totalorder %s13_s14, 4   ;;  %s2598_s13 = smov %s2600_s15 }
 0x9c2   :  { %12 = sbr.rel (!%p10_p5) target bundleno = 2 (0x2), region = 68 }

</bundles_post_ra>
